<compile_context>
chip_gen: v7x
topology: tpu7x:2x2x1
jax: 0.10.0
libtpu: 0.0.40
codegen_flags: <defaults>
</compile_context>

<pallas_src>
import functools

import jax
import jax.numpy as jnp
from jax.experimental import pallas as pl
from jax.experimental.pallas import tpu as pltpu

X_DIM = 3
X_PAD = 8          # x features zero-padded to 8 so blocks stay layout-friendly
H_DIM = 32
MSG_DIM = 2


def _round_up(v, m):
    return ((v + m - 1) // m) * m


# --------------------------------------------------------------------------------------
# Stage 1: scatter-add of messages + node update + belief decoder
#   grid = (node_tiles [parallel], edge_tiles [arbitrary / reduction])
# --------------------------------------------------------------------------------------
def _node_kernel(x_ref, dst_ref, h_msg_ref, w32_ref, w2_ref,
                 h_node_ref, y_bel_ref, agg_ref):
    k = pl.program_id(1)
    tn = agg_ref.shape[0]
    te = h_msg_ref.shape[0]

    @pl.when(k == 0)
    def _init():
        agg_ref[...] = jnp.zeros_like(agg_ref)

    # scatter-add (aggr='add') via an in-register one-hot over the current node tile:
    #   onehot[n, e] = (node_base + n == dst[e]);  agg += onehot @ h_msg_tile
    node_base = pl.program_id(0) * tn
    node_ids = jax.lax.broadcasted_iota(jnp.int32, (tn, te), 0) + node_base
    onehot = (node_ids == dst_ref[...]).astype(jnp.bfloat16)            # [tn, te]
    agg_ref[...] += jnp.dot(onehot, h_msg_ref[...],                     # bf16 x bf16 -> f32
                            preferred_element_type=jnp.float32)

    @pl.when(k == pl.num_programs(1) - 1)
    def _finalize():
        x = x_ref[...]                                                  # [tn, X_PAD] f32
        wn1 = w32_ref[0:X_PAD, :]                                       # folded lin_in @ wn1
        wn2 = w32_ref[X_PAD:X_PAD + H_DIM, :]
        bn = w32_ref[40:41, :]
        h_node = jnp.maximum(
            jnp.dot(x, wn1, preferred_element_type=jnp.float32)
            + jnp.dot(agg_ref[...], wn2, preferred_element_type=jnp.float32)
            + bn, 0.0)
        h_node_ref[...] = h_node.astype(h_node_ref.dtype)               # bf16 intermediate

        wb1 = w2_ref[0:H_DIM, :]                                        # belief decoder
        wb2 = w2_ref[H_DIM:H_DIM + X_PAD, :]
        bb = w2_ref[40:41, :]
        y_bel_ref[...] = (jnp.dot(h_node, wb1, preferred_element_type=jnp.float32)
                          + jnp.dot(x, wb2, preferred_element_type=jnp.float32)
                          + bb)


# --------------------------------------------------------------------------------------
# Stage 2: gather of source-node state + message update + decoder
#   grid = (edge_tiles [parallel], node_tiles [arbitrary / reduction over node tiles])
# --------------------------------------------------------------------------------------
def _edge_kernel(src_ref, h_msg_ref, h_node_ref, w32_ref, w2_ref,
                 h_msg_out_ref, y_msg_ref, hsrc_ref):
    j = pl.program_id(1)
    tn2 = h_node_ref.shape[0]
    te = h_msg_ref.shape[0]

    @pl.when(j == 0)
    def _init():
        hsrc_ref[...] = jnp.zeros_like(hsrc_ref)

    # gather h_node[src] restricted to this node tile:
    #   onehot[n, e] = (node_base + n == src[e]);  h_src += onehot^T @ h_node_tile
    node_base = pl.program_id(1) * tn2
    node_ids = jax.lax.broadcasted_iota(jnp.int32, (tn2, te), 0) + node_base
    onehot = (node_ids == src_ref[...]).astype(jnp.bfloat16)            # [tn2, te]
    hsrc_ref[...] += jax.lax.dot_general(                               # trans-A matmul
        onehot, h_node_ref[...], (((0,), (0,)), ((), ())),
        preferred_element_type=jnp.float32)                             # [te, H]

    @pl.when(j == pl.num_programs(1) - 1)
    def _finalize():
        wm1 = w32_ref[0:H_DIM, :]
        wm2 = w32_ref[H_DIM:2 * H_DIM, :]                               # folded encoder @ wm2
        bm = w32_ref[2 * H_DIM:2 * H_DIM + 1, :]
        h_msg = h_msg_ref[...].astype(jnp.float32)
        h_new = jnp.maximum(
            jnp.dot(hsrc_ref[...], wm1, preferred_element_type=jnp.float32)
            + jnp.dot(h_msg, wm2, preferred_element_type=jnp.float32)
            + bm, 0.0)
        h_msg_out_ref[...] = h_new

        wd = w2_ref[0:H_DIM, :]                                         # decoder
        bd = w2_ref[H_DIM:H_DIM + 1, :]
        y_msg_ref[...] = jnp.dot(h_new, wd, preferred_element_type=jnp.float32) + bd


# --------------------------------------------------------------------------------------
# Parameters (unfused, reference layout) + host-side folding/packing into VMEM slabs.
# --------------------------------------------------------------------------------------
def init_params(key):
    def lin(key, fan_in, fan_out):
        kw, kb = jax.random.split(key)
        scale = 1.0 / jnp.sqrt(jnp.float32(fan_in))
        w = jax.random.uniform(kw, (fan_in, fan_out), jnp.float32, -scale, scale)
        b = jax.random.uniform(kb, (1, fan_out), jnp.float32, -scale, scale)
        return w, b

    keys = jax.random.split(key, 7)
    w_in, b_in = lin(keys[0], X_DIM, H_DIM)          # model.lin_in
    w_enc, b_enc = lin(keys[1], H_DIM, H_DIM)        # encoder (LoopEncoderLayer)
    wn, bn = lin(keys[2], 2 * H_DIM, H_DIM)          # processor node MLP (on [h_node0, agg])
    wm, bm = lin(keys[3], 2 * H_DIM, H_DIM)          # processor msg MLP (on [h_src, enc])
    w_dec, b_dec = lin(keys[4], H_DIM, MSG_DIM)      # model.decoder
    wb, bb = lin(keys[5], H_DIM + X_DIM, MSG_DIM)    # model.belief_decoder (on [h_node, x])
    wn1, wn2 = wn[:H_DIM], wn[H_DIM:]
    wm1, wm2 = wm[:H_DIM], wm[H_DIM:]
    wb1, wb2 = wb[:H_DIM], wb[H_DIM:]
    return (w_in, b_in, w_enc, b_enc, wn1, wn2, bn, wm1, wm2, bm,
            w_dec, b_dec, wb1, wb2, bb)


def fold_and_pack_params(params):
    (w_in, b_in, w_enc, b_enc, wn1, wn2, bn, wm1, wm2, bm,
     w_dec, b_dec, wb1, wb2, bb) = params
    f32 = jnp.float32

    # algebraic folding (numerics change only by fp rounding order)
    wn1_f = (w_in @ wn1).astype(f32)                 # [3, 32]
    bn_f = (bn + b_in @ wn1).astype(f32)             # [1, 32]
    wm2_f = (w_enc @ wm2).astype(f32)                # [32, 32]
    bm_f = (bm + b_enc @ wm2).astype(f32)            # [1, 32]

    # stage-1 slabs
    w32_node = jnp.zeros((48, H_DIM), f32)
    w32_node = w32_node.at[0:X_DIM, :].set(wn1_f)                       # rows 0:8  (x -> node)
    w32_node = w32_node.at[X_PAD:X_PAD + H_DIM, :].set(wn2)             # rows 8:40 (agg -> node)
    w32_node = w32_node.at[40:41, :].set(bn_f)                          # row 40    (bias)

    w2_node = jnp.zeros((48, MSG_DIM), f32)
    w2_node = w2_node.at[0:H_DIM, :].set(wb1)                           # rows 0:32 (h_node -> bel)
    w2_node = w2_node.at[H_DIM:H_DIM + X_DIM, :].set(wb2)               # rows 32:40 (x -> bel)
    w2_node = w2_node.at[40:41, :].set(bb)                              # row 40    (bias)

    # stage-2 slabs
    w32_edge = jnp.zeros((72, H_DIM), f32)
    w32_edge = w32_edge.at[0:H_DIM, :].set(wm1)                         # rows 0:32  (h_src -> msg)
    w32_edge = w32_edge.at[H_DIM:2 * H_DIM, :].set(wm2_f)               # rows 32:64 (h_msg -> msg)
    w32_edge = w32_edge.at[2 * H_DIM:2 * H_DIM + 1, :].set(bm_f)        # row 64     (bias)

    w2_edge = jnp.zeros((40, MSG_DIM), f32)
    w2_edge = w2_edge.at[0:H_DIM, :].set(w_dec)                         # rows 0:32 (decoder)
    w2_edge = w2_edge.at[H_DIM:H_DIM + 1, :].set(b_dec)                 # row 32    (bias)
    return w32_node, w2_node, w32_edge, w2_edge


# --------------------------------------------------------------------------------------
# Wrapper
# --------------------------------------------------------------------------------------
def mpnn_forward(x, edge_index, h_msg, params, *, tn=1024, te=512, tn2=512):
    n_nodes = x.shape[0]
    n_edges = h_msg.shape[0]
    f32 = jnp.float32
    bf16 = jnp.bfloat16

    # tile sizing: tn (stage-1 node tile), te (edge tile), tn2 (stage-2 node tile, divides tn)
    tn = max(8, _round_up(tn, 8))
    tn = min(tn, _round_up(n_nodes, 8))
    te = max(128, _round_up(te, 128))
    te = min(te, _round_up(n_edges, 128))
    tn2 = max(8, min(_round_up(tn2, 8), tn))
    while tn % tn2:
        tn2 -= 8
    n_pad = _round_up(n_nodes, tn)
    e_pad = _round_up(n_edges, te)

    src = edge_index[0].astype(jnp.int32)
    dst = edge_index[1].astype(jnp.int32)

    # padded, layout-friendly operands; message/node streams stored in bf16
    x_pad = jnp.zeros((n_pad, X_PAD), f32).at[:n_nodes, :X_DIM].set(x.astype(f32))
    h_msg_pad = jnp.zeros((e_pad, H_DIM), bf16).at[:n_edges, :].set(h_msg.astype(bf16))
    dst_row = jnp.full((1, e_pad), -1, jnp.int32).at[0, :n_edges].set(dst)   # -1: pad edge
    src_row = jnp.full((1, e_pad), -1, jnp.int32).at[0, :n_edges].set(src)   # -1: pad edge

    w32_node, w2_node, w32_edge, w2_edge = fold_and_pack_params(params)

    vmem_limit = 48 * 1024 * 1024     # headroom on v7x (64 MiB physical)
    n_tiles1 = n_pad // tn
    e_tiles = e_pad // te
    n_tiles2 = n_pad // tn2

    # ---------------- stage 1: scatter-add + node update + belief decoder ----------------
    flops_node = int(2 * n_pad * e_pad * H_DIM
                     + 2 * n_pad * (X_PAD * H_DIM + H_DIM * H_DIM
                                    + H_DIM * MSG_DIM + X_PAD * MSG_DIM))
    bytes_node = int(n_tiles1 * e_pad * (2 * H_DIM + 4)        # h_msg (bf16) + dst per node tile
                     + n_pad * X_PAD * 4                       # x
                     + n_pad * (2 * H_DIM + 4 * MSG_DIM)       # h_node (bf16) + y_bel writes
                     + 4 * (w32_node.size + w2_node.size))
    h_node_bf, y_bel_pad = pl.pallas_call(
        _node_kernel,
        out_shape=(jax.ShapeDtypeStruct((n_pad, H_DIM), bf16),
                   jax.ShapeDtypeStruct((n_pad, MSG_DIM), f32)),
        grid=(n_pad // tn, e_pad // te),
        in_specs=[
            pl.BlockSpec((tn, X_PAD), lambda i, k: (i, 0)),
            pl.BlockSpec((1, te), lambda i, k: (0, k)),
            pl.BlockSpec((te, H_DIM), lambda i, k: (k, 0)),
            pl.BlockSpec(w32_node.shape, lambda i, k: (0, 0)),
            pl.BlockSpec(w2_node.shape, lambda i, k: (0, 0)),
        ],
        out_specs=(
            pl.BlockSpec((tn, H_DIM), lambda i, k: (i, 0)),
            pl.BlockSpec((tn, MSG_DIM), lambda i, k: (i, 0)),
        ),
        scratch_shapes=[pltpu.VMEM((tn, H_DIM), f32)],
        compiler_params=pltpu.CompilerParams(
            dimension_semantics=("parallel", "arbitrary"),
            vmem_limit_bytes=vmem_limit),
        cost_estimate=pl.CostEstimate(flops=flops_node, transcendentals=0,
                                      bytes_accessed=bytes_node),
    )(x_pad, dst_row, h_msg_pad, w32_node, w2_node)

    # ---------------- stage 2: gather + message update + decoder ----------------
    flops_edge = int(2 * e_pad * n_pad * H_DIM
                     + 2 * e_pad * (2 * H_DIM * H_DIM + H_DIM * MSG_DIM))
    bytes_edge = int(e_tiles * n_pad * 2 * H_DIM               # h_node (bf16) per edge tile
                     + e_pad * (2 * H_DIM + 4)                 # h_msg (bf16) + src
                     + e_pad * (4 * H_DIM + 4 * MSG_DIM)       # h_msg_new + y_msg writes
                     + 4 * (w32_edge.size + w2_edge.size))
    h_msg_new_pad, y_msg_pad = pl.pallas_call(
        _edge_kernel,
        out_shape=(jax.ShapeDtypeStruct((e_pad, H_DIM), f32),
                   jax.ShapeDtypeStruct((e_pad, MSG_DIM), f32)),
        grid=(e_pad // te, n_pad // tn2),
        in_specs=[
            pl.BlockSpec((1, te), lambda i, j: (0, i)),
            pl.BlockSpec((te, H_DIM), lambda i, j: (i, 0)),
            pl.BlockSpec((tn2, H_DIM), lambda i, j: (j, 0)),
            pl.BlockSpec(w32_edge.shape, lambda i, j: (0, 0)),
            pl.BlockSpec(w2_edge.shape, lambda i, j: (0, 0)),
        ],
        out_specs=(
            pl.BlockSpec((te, H_DIM), lambda i, j: (i, 0)),
            pl.BlockSpec((te, MSG_DIM), lambda i, j: (i, 0)),
        ),
        scratch_shapes=[pltpu.VMEM((te, H_DIM), f32)],
        compiler_params=pltpu.CompilerParams(
            dimension_semantics=("parallel", "arbitrary"),
            vmem_limit_bytes=vmem_limit),
        cost_estimate=pl.CostEstimate(flops=flops_edge, transcendentals=0,
                                      bytes_accessed=bytes_edge),
    )(src_row, h_msg_pad, h_node_bf, w32_edge, w2_edge)

    h_msg_out = h_msg_new_pad[:n_edges]
    y_msg = y_msg_pad[:n_edges]
    y_beliefs = y_bel_pad[:n_nodes]
    return h_msg_out, y_msg, y_beliefs


# --------------------------------------------------------------------------------------
# Pure-JAX reference (unfused weights) for validation
# --------------------------------------------------------------------------------------
def reference_forward(x, edge_index, h_msg, params):
    (w_in, b_in, w_enc, b_enc, wn1, wn2, bn, wm1, wm2, bm,
     w_dec, b_dec, wb1, wb2, bb) = params
    src = edge_index[0]
    dst = edge_index[1]
    h_node0 = x @ w_in + b_in
    enc = h_msg @ w_enc + b_enc
    agg = jnp.zeros((x.shape[0], H_DIM), jnp.float32).at[dst].add(h_msg)
    h_node = jnp.maximum(h_node0 @ wn1 + agg @ wn2 + bn, 0.0)
    h_src = h_node[src]
    h_msg_new = jnp.maximum(h_src @ wm1 + enc @ wm2 + bm, 0.0)
    y_msg = h_msg_new @ w_dec + b_dec
    y_bel = h_node @ wb1 + x @ wb2 + bb
    return h_msg_new, y_msg, y_bel


if __name__ == "__main__":
    key = jax.random.PRNGKey(0)
    k_x, k_msg, k_params = jax.random.split(key, 3)

    # bidirectional ring graph: 80 nodes -> 160 directed edges
    n_nodes = 80
    ring = jnp.arange(n_nodes)
    src = jnp.concatenate([ring, (ring + 1) % n_nodes])
    dst = jnp.concatenate([(ring + 1) % n_nodes, ring])
    edge_index = jnp.stack([src, dst]).astype(jnp.int32)    # [2, 160]
    n_edges = edge_index.shape[1]

    x = jax.random.normal(k_x, (n_nodes, X_DIM), jnp.float32)        # data.x
    h_msg = jax.random.normal(k_msg, (n_edges, H_DIM), jnp.float32)  # incoming messages
    params = init_params(k_params)

    # small tiles here to exercise multi-tile grids + padding; defaults are larger.
    fwd = jax.jit(functools.partial(mpnn_forward, tn=32, te=128, tn2=16))
    h_msg_out, y_msg, y_beliefs = fwd(x, edge_index, h_msg, params)
    jax.block_until_ready((h_msg_out, y_msg, y_beliefs))

    assert h_msg_out.shape == (n_edges, H_DIM)
    assert y_msg.shape == (n_edges, MSG_DIM)
    assert y_beliefs.shape == (n_nodes, MSG_DIM)

    with jax.default_matmul_precision("highest"):
        ref_h, ref_ym, ref_yb = reference_forward(x, edge_index, h_msg, params)
    # tolerance: bf16 scatter/gather operands (f32 accumulation) + folded-weight rounding order
    assert jnp.allclose(h_msg_out, ref_h, atol=5e-2, rtol=5e-2)
    assert jnp.allclose(y_msg, ref_ym, atol=5e-2, rtol=5e-2)
    assert jnp.allclose(y_beliefs, ref_yb, atol=5e-2, rtol=5e-2)

    print("KERNEL_OK")
</pallas_src>

<mosaic_0001>
module attributes {stable_mosaic.version = 11 : i64} {
  func.func @_node_kernel(%arg0: i32, %arg1: i32, %arg2: memref<32x8xf32, #tpu.memory_space<vmem>>, %arg3: memref<1x128xi32, #tpu.memory_space<vmem>>, %arg4: memref<128x32xbf16, #tpu.memory_space<vmem>>, %arg5: memref<48x32xf32, #tpu.memory_space<vmem>>, %arg6: memref<48x2xf32, #tpu.memory_space<vmem>>, %arg7: memref<32x32xbf16, #tpu.memory_space<vmem>>, %arg8: memref<32x2xf32, #tpu.memory_space<vmem>>, %arg9: memref<32x32xf32, #tpu.memory_space<vmem>>) attributes {dimension_semantics = [#tpu.dimension_semantics<parallel>, #tpu.dimension_semantics<arbitrary>], iteration_bounds = array<i64: 3, 2>, scalar_prefetch = 0 : i64, scratch_operands = 1 : i64, tpu.core_type = #tpu.core_type<tc>, window_params = [{transform_indices = @transform_0, window_bounds = array<i64: 32, 8>}, {transform_indices = @transform_1, window_bounds = array<i64: 1, 128>}, {transform_indices = @transform_2, window_bounds = array<i64: 128, 32>}, {pipeline_mode = #tpu.pipeline_mode<synchronous>, transform_indices = @transform_3, window_bounds = array<i64: 48, 32>}, {pipeline_mode = #tpu.pipeline_mode<synchronous>, transform_indices = @transform_4, window_bounds = array<i64: 48, 2>}, {transform_indices = @transform_5, window_bounds = array<i64: 32, 32>}, {transform_indices = @transform_6, window_bounds = array<i64: 32, 2>}]} {
    %c0_i32 = arith.constant 0 : i32
    %0 = arith.cmpi eq, %arg1, %c0_i32 : i32
    %1 = arith.extui %0 : i1 to i32
    %c0_i32_0 = arith.constant 0 : i32
    %2 = arith.cmpi ne, %1, %c0_i32_0 : i32
    scf.if %2 {
      %cst_9 = arith.constant 0.000000e+00 : f32
      %21 = vector.broadcast %cst_9 : f32 to vector<32x32xf32>
      %c0_10 = arith.constant 0 : index
      %c0_11 = arith.constant 0 : index
      %22 = vector.load %arg9[%c0_10, %c0_11] : memref<32x32xf32, #tpu.memory_space<vmem>>, vector<32x32xf32>
      tpu.vector_store %arg9[%c0_10, %c0_11], %21 {strides = array<i32>} : memref<32x32xf32, #tpu.memory_space<vmem>>, vector<32x32xf32>,
    } else {
    }
    %c32_i32 = arith.constant 32 : i32
    %3 = arith.muli %arg0, %c32_i32 : i32
    %4 = tpu.iota {dimensions = array<i32: 0>} : vector<32x128xi32>
    %5 = vector.broadcast %3 : i32 to vector<32x128xi32>
    %6 = arith.addi %4, %5 : vector<32x128xi32>
    %c0 = arith.constant 0 : index
    %c0_1 = arith.constant 0 : index
    %7 = vector.load %arg3[%c0, %c0_1] : memref<1x128xi32, #tpu.memory_space<vmem>>, vector<1x128xi32>
    %8 = vector.broadcast %7 : vector<1x128xi32> to vector<32x128xi32>
    %9 = arith.cmpi eq, %6, %8 : vector<32x128xi32>
    %10 = arith.extui %9 : vector<32x128xi1> to vector<32x128xi32>
    %11 = arith.sitofp %10 : vector<32x128xi32> to vector<32x128xf32>
    %12 = arith.truncf %11 : vector<32x128xf32> to vector<32x128xbf16>
    %c0_2 = arith.constant 0 : index
    %c0_3 = arith.constant 0 : index
    %13 = vector.load %arg9[%c0_2, %c0_3] : memref<32x32xf32, #tpu.memory_space<vmem>>, vector<32x32xf32>
    %c0_4 = arith.constant 0 : index
    %c0_5 = arith.constant 0 : index
    %14 = vector.load %arg4[%c0_4, %c0_5] : memref<128x32xbf16, #tpu.memory_space<vmem>>, vector<128x32xbf16>
    %cst = arith.constant dense<0.000000e+00> : vector<32x32xf32>
    %15 = tpu.matmul %12, %14, %cst {dimension_numbers = #tpu.dot_dimension_numbers<[1], [0], [0], [1], [0, 0, 1, 1], [], []>} : vector<32x128xbf16>, vector<128x32xbf16>, vector<32x32xf32> -> vector<32x32xf32>
    %16 = arith.addf %13, %15 : vector<32x32xf32>
    %c0_6 = arith.constant 0 : index
    %c0_7 = arith.constant 0 : index
    %17 = vector.load %arg9[%c0_6, %c0_7] : memref<32x32xf32, #tpu.memory_space<vmem>>, vector<32x32xf32>
    tpu.vector_store %arg9[%c0_6, %c0_7], %16 {strides = array<i32>} : memref<32x32xf32, #tpu.memory_space<vmem>>, vector<32x32xf32>,
    %c1_i32 = arith.constant 1 : i32
    %18 = arith.cmpi eq, %arg1, %c1_i32 : i32
    %19 = arith.extui %18 : i1 to i32
    %c0_i32_8 = arith.constant 0 : i32
    %20 = arith.cmpi ne, %19, %c0_i32_8 : i32
    scf.if %20 {
      %c0_9 = arith.constant 0 : index
      %c0_10 = arith.constant 0 : index
      %21 = vector.load %arg2[%c0_9, %c0_10] : memref<32x8xf32, #tpu.memory_space<vmem>>, vector<32x8xf32>
      %c0_11 = arith.constant 0 : index
      %c0_12 = arith.constant 0 : index
      %22 = vector.load %arg5[%c0_11, %c0_12] : memref<48x32xf32, #tpu.memory_space<vmem>>, vector<8x32xf32>
      %c8 = arith.constant 8 : index
      %c0_13 = arith.constant 0 : index
      %23 = vector.load %arg5[%c8, %c0_13] : memref<48x32xf32, #tpu.memory_space<vmem>>, vector<32x32xf32>
      %c40 = arith.constant 40 : index
      %c0_14 = arith.constant 0 : index
      %24 = vector.load %arg5[%c40, %c0_14] : memref<48x32xf32, #tpu.memory_space<vmem>>, vector<1x32xf32>
      %cst_15 = arith.constant dense<0.000000e+00> : vector<32x32xf32>
      %25 = tpu.matmul %21, %22, %cst_15 {dimension_numbers = #tpu.dot_dimension_numbers<[1], [0], [0], [1], [0, 0, 1, 1], [], []>} : vector<32x8xf32>, vector<8x32xf32>, vector<32x32xf32> -> vector<32x32xf32>
      %c0_16 = arith.constant 0 : index
      %c0_17 = arith.constant 0 : index
      %26 = vector.load %arg9[%c0_16, %c0_17] : memref<32x32xf32, #tpu.memory_space<vmem>>, vector<32x32xf32>
      %cst_18 = arith.constant dense<0.000000e+00> : vector<32x32xf32>
      %27 = tpu.matmul %26, %23, %cst_18 {dimension_numbers = #tpu.dot_dimension_numbers<[1], [0], [0], [1], [0, 0, 1, 1], [], []>} : vector<32x32xf32>, vector<32x32xf32>, vector<32x32xf32> -> vector<32x32xf32>
      %28 = arith.addf %25, %27 : vector<32x32xf32>
      %29 = vector.broadcast %24 : vector<1x32xf32> to vector<32x32xf32>
      %30 = arith.addf %28, %29 : vector<32x32xf32>
      %cst_19 = arith.constant 0.000000e+00 : f32
      %31 = vector.broadcast %cst_19 : f32 to vector<32x32xf32>
      %32 = arith.maximumf %30, %31 : vector<32x32xf32>
      %33 = arith.truncf %32 : vector<32x32xf32> to vector<32x32xbf16>
      %c0_20 = arith.constant 0 : index
      %c0_21 = arith.constant 0 : index
      %34 = vector.load %arg7[%c0_20, %c0_21] : memref<32x32xbf16, #tpu.memory_space<vmem>>, vector<32x32xbf16>
      tpu.vector_store %arg7[%c0_20, %c0_21], %33 {strides = array<i32>} : memref<32x32xbf16, #tpu.memory_space<vmem>>, vector<32x32xbf16>,
      %c0_22 = arith.constant 0 : index
      %c0_23 = arith.constant 0 : index
      %35 = vector.load %arg6[%c0_22, %c0_23] : memref<48x2xf32, #tpu.memory_space<vmem>>, vector<32x2xf32>
      %c32 = arith.constant 32 : index
      %c0_24 = arith.constant 0 : index
      %36 = vector.load %arg6[%c32, %c0_24] : memref<48x2xf32, #tpu.memory_space<vmem>>, vector<8x2xf32>
      %c40_25 = arith.constant 40 : index
      %c0_26 = arith.constant 0 : index
      %37 = vector.load %arg6[%c40_25, %c0_26] : memref<48x2xf32, #tpu.memory_space<vmem>>, vector<1x2xf32>
      %cst_27 = arith.constant dense<0.000000e+00> : vector<32x2xf32>
      %38 = tpu.matmul %32, %35, %cst_27 {dimension_numbers = #tpu.dot_dimension_numbers<[1], [0], [0], [1], [0, 0, 1, 1], [], []>} : vector<32x32xf32>, vector<32x2xf32>, vector<32x2xf32> -> vector<32x2xf32>
      %cst_28 = arith.constant dense<0.000000e+00> : vector<32x2xf32>
      %39 = tpu.matmul %21, %36, %cst_28 {dimension_numbers = #tpu.dot_dimension_numbers<[1], [0], [0], [1], [0, 0, 1, 1], [], []>} : vector<32x8xf32>, vector<8x2xf32>, vector<32x2xf32> -> vector<32x2xf32>
      %40 = arith.addf %38, %39 : vector<32x2xf32>
      %41 = vector.broadcast %37 : vector<1x2xf32> to vector<32x2xf32>
      %42 = arith.addf %40, %41 : vector<32x2xf32>
      %c0_29 = arith.constant 0 : index
      %c0_30 = arith.constant 0 : index
      %43 = vector.load %arg8[%c0_29, %c0_30] : memref<32x2xf32, #tpu.memory_space<vmem>>, vector<32x2xf32>
      tpu.vector_store %arg8[%c0_29, %c0_30], %42 {strides = array<i32>} : memref<32x2xf32, #tpu.memory_space<vmem>>, vector<32x2xf32>,
    } else {
    }
    return
  }
  func.func @transform_0(%arg0: i32, %arg1: i32) -> (i32, i32) {
    %c0_i32 = arith.constant 0 : i32
    %c0_i32_0 = arith.constant 0 : i32
    return %arg0, %c0_i32 : i32, i32
  }
  func.func @transform_1(%arg0: i32, %arg1: i32) -> (i32, i32) {
    %c0_i32 = arith.constant 0 : i32
    %c0_i32_0 = arith.constant 0 : i32
    return %c0_i32, %arg1 : i32, i32
  }
  func.func @transform_2(%arg0: i32, %arg1: i32) -> (i32, i32) {
    %c0_i32 = arith.constant 0 : i32
    %c0_i32_0 = arith.constant 0 : i32
    return %arg1, %c0_i32 : i32, i32
  }
  func.func @transform_3(%arg0: i32, %arg1: i32) -> (i32, i32) {
    %c0_i32 = arith.constant 0 : i32
    %c0_i32_0 = arith.constant 0 : i32
    %c0_i32_1 = arith.constant 0 : i32
    return %c0_i32, %c0_i32_0 : i32, i32
  }
  func.func @transform_4(%arg0: i32, %arg1: i32) -> (i32, i32) {
    %c0_i32 = arith.constant 0 : i32
    %c0_i32_0 = arith.constant 0 : i32
    %c0_i32_1 = arith.constant 0 : i32
    return %c0_i32, %c0_i32_0 : i32, i32
  }
  func.func @transform_5(%arg0: i32, %arg1: i32) -> (i32, i32) {
    %c0_i32 = arith.constant 0 : i32
    %c0_i32_0 = arith.constant 0 : i32
    return %arg0, %c0_i32 : i32, i32
  }
  func.func @transform_6(%arg0: i32, %arg1: i32) -> (i32, i32) {
    %c0_i32 = arith.constant 0 : i32
    %c0_i32_0 = arith.constant 0 : i32
    return %arg0, %c0_i32 : i32, i32
  }
}

module attributes {stable_mosaic.version = 11 : i64} {
  func.func @_edge_kernel(%arg0: i32, %arg1: i32, %arg2: memref<1x128xi32, #tpu.memory_space<vmem>>, %arg3: memref<128x32xbf16, #tpu.memory_space<vmem>>, %arg4: memref<16x32xbf16, #tpu.memory_space<vmem>>, %arg5: memref<72x32xf32, #tpu.memory_space<vmem>>, %arg6: memref<40x2xf32, #tpu.memory_space<vmem>>, %arg7: memref<128x32xf32, #tpu.memory_space<vmem>>, %arg8: memref<128x2xf32, #tpu.memory_space<vmem>>, %arg9: memref<128x32xf32, #tpu.memory_space<vmem>>) attributes {dimension_semantics = [#tpu.dimension_semantics<parallel>, #tpu.dimension_semantics<arbitrary>], iteration_bounds = array<i64: 2, 6>, scalar_prefetch = 0 : i64, scratch_operands = 1 : i64, tpu.core_type = #tpu.core_type<tc>, window_params = [{transform_indices = @transform_0, window_bounds = array<i64: 1, 128>}, {transform_indices = @transform_1, window_bounds = array<i64: 128, 32>}, {transform_indices = @transform_2, window_bounds = array<i64: 16, 32>}, {pipeline_mode = #tpu.pipeline_mode<synchronous>, transform_indices = @transform_3, window_bounds = array<i64: 72, 32>}, {pipeline_mode = #tpu.pipeline_mode<synchronous>, transform_indices = @transform_4, window_bounds = array<i64: 40, 2>}, {transform_indices = @transform_5, window_bounds = array<i64: 128, 32>}, {transform_indices = @transform_6, window_bounds = array<i64: 128, 2>}]} {
    %c0_i32 = arith.constant 0 : i32
    %0 = arith.cmpi eq, %arg1, %c0_i32 : i32
    %1 = arith.extui %0 : i1 to i32
    %c0_i32_0 = arith.constant 0 : i32
    %2 = arith.cmpi ne, %1, %c0_i32_0 : i32
    scf.if %2 {
      %cst_9 = arith.constant 0.000000e+00 : f32
      %21 = vector.broadcast %cst_9 : f32 to vector<128x32xf32>
      %c0_10 = arith.constant 0 : index
      %c0_11 = arith.constant 0 : index
      %22 = vector.load %arg9[%c0_10, %c0_11] : memref<128x32xf32, #tpu.memory_space<vmem>>, vector<128x32xf32>
      tpu.vector_store %arg9[%c0_10, %c0_11], %21 {strides = array<i32>} : memref<128x32xf32, #tpu.memory_space<vmem>>, vector<128x32xf32>,
    } else {
    }
    %c16_i32 = arith.constant 16 : i32
    %3 = arith.muli %arg1, %c16_i32 : i32
    %4 = tpu.iota {dimensions = array<i32: 0>} : vector<16x128xi32>
    %5 = vector.broadcast %3 : i32 to vector<16x128xi32>
    %6 = arith.addi %4, %5 : vector<16x128xi32>
    %c0 = arith.constant 0 : index
    %c0_1 = arith.constant 0 : index
    %7 = vector.load %arg2[%c0, %c0_1] : memref<1x128xi32, #tpu.memory_space<vmem>>, vector<1x128xi32>
    %8 = vector.broadcast %7 : vector<1x128xi32> to vector<16x128xi32>
    %9 = arith.cmpi eq, %6, %8 : vector<16x128xi32>
    %10 = arith.extui %9 : vector<16x128xi1> to vector<16x128xi32>
    %11 = arith.sitofp %10 : vector<16x128xi32> to vector<16x128xf32>
    %12 = arith.truncf %11 : vector<16x128xf32> to vector<16x128xbf16>
    %c0_2 = arith.constant 0 : index
    %c0_3 = arith.constant 0 : index
    %13 = vector.load %arg9[%c0_2, %c0_3] : memref<128x32xf32, #tpu.memory_space<vmem>>, vector<128x32xf32>
    %c0_4 = arith.constant 0 : index
    %c0_5 = arith.constant 0 : index
    %14 = vector.load %arg4[%c0_4, %c0_5] : memref<16x32xbf16, #tpu.memory_space<vmem>>, vector<16x32xbf16>
    %cst = arith.constant dense<0.000000e+00> : vector<128x32xf32>
    %15 = tpu.matmul %12, %14, %cst {dimension_numbers = #tpu.dot_dimension_numbers<[0], [0], [1], [1], [0, 1, 1, 1], [], []>} : vector<16x128xbf16>, vector<16x32xbf16>, vector<128x32xf32> -> vector<128x32xf32>
    %16 = arith.addf %13, %15 : vector<128x32xf32>
    %c0_6 = arith.constant 0 : index
    %c0_7 = arith.constant 0 : index
    %17 = vector.load %arg9[%c0_6, %c0_7] : memref<128x32xf32, #tpu.memory_space<vmem>>, vector<128x32xf32>
    tpu.vector_store %arg9[%c0_6, %c0_7], %16 {strides = array<i32>} : memref<128x32xf32, #tpu.memory_space<vmem>>, vector<128x32xf32>,
    %c5_i32 = arith.constant 5 : i32
    %18 = arith.cmpi eq, %arg1, %c5_i32 : i32
    %19 = arith.extui %18 : i1 to i32
    %c0_i32_8 = arith.constant 0 : i32
    %20 = arith.cmpi ne, %19, %c0_i32_8 : i32
    scf.if %20 {
      %c0_9 = arith.constant 0 : index
      %c0_10 = arith.constant 0 : index
      %21 = vector.load %arg5[%c0_9, %c0_10] : memref<72x32xf32, #tpu.memory_space<vmem>>, vector<32x32xf32>
      %c32 = arith.constant 32 : index
      %c0_11 = arith.constant 0 : index
      %22 = vector.load %arg5[%c32, %c0_11] : memref<72x32xf32, #tpu.memory_space<vmem>>, vector<32x32xf32>
      %c64 = arith.constant 64 : index
      %c0_12 = arith.constant 0 : index
      %23 = vector.load %arg5[%c64, %c0_12] : memref<72x32xf32, #tpu.memory_space<vmem>>, vector<1x32xf32>
      %c0_13 = arith.constant 0 : index
      %c0_14 = arith.constant 0 : index
      %24 = vector.load %arg3[%c0_13, %c0_14] : memref<128x32xbf16, #tpu.memory_space<vmem>>, vector<128x32xbf16>
      %25 = arith.extf %24 : vector<128x32xbf16> to vector<128x32xf32>
      %c0_15 = arith.constant 0 : index
      %c0_16 = arith.constant 0 : index
      %26 = vector.load %arg9[%c0_15, %c0_16] : memref<128x32xf32, #tpu.memory_space<vmem>>, vector<128x32xf32>
      %cst_17 = arith.constant dense<0.000000e+00> : vector<128x32xf32>
      %27 = tpu.matmul %26, %21, %cst_17 {dimension_numbers = #tpu.dot_dimension_numbers<[1], [0], [0], [1], [0, 0, 1, 1], [], []>} : vector<128x32xf32>, vector<32x32xf32>, vector<128x32xf32> -> vector<128x32xf32>
      %cst_18 = arith.constant dense<0.000000e+00> : vector<128x32xf32>
      %28 = tpu.matmul %25, %22, %cst_18 {dimension_numbers = #tpu.dot_dimension_numbers<[1], [0], [0], [1], [0, 0, 1, 1], [], []>} : vector<128x32xf32>, vector<32x32xf32>, vector<128x32xf32> -> vector<128x32xf32>
      %29 = arith.addf %27, %28 : vector<128x32xf32>
      %30 = vector.broadcast %23 : vector<1x32xf32> to vector<128x32xf32>
      %31 = arith.addf %29, %30 : vector<128x32xf32>
      %cst_19 = arith.constant 0.000000e+00 : f32
      %32 = vector.broadcast %cst_19 : f32 to vector<128x32xf32>
      %33 = arith.maximumf %31, %32 : vector<128x32xf32>
      %c0_20 = arith.constant 0 : index
      %c0_21 = arith.constant 0 : index
      %34 = vector.load %arg7[%c0_20, %c0_21] : memref<128x32xf32, #tpu.memory_space<vmem>>, vector<128x32xf32>
      tpu.vector_store %arg7[%c0_20, %c0_21], %33 {strides = array<i32>} : memref<128x32xf32, #tpu.memory_space<vmem>>, vector<128x32xf32>,
      %c0_22 = arith.constant 0 : index
      %c0_23 = arith.constant 0 : index
      %35 = vector.load %arg6[%c0_22, %c0_23] : memref<40x2xf32, #tpu.memory_space<vmem>>, vector<32x2xf32>
      %c32_24 = arith.constant 32 : index
      %c0_25 = arith.constant 0 : index
      %36 = vector.load %arg6[%c32_24, %c0_25] : memref<40x2xf32, #tpu.memory_space<vmem>>, vector<1x2xf32>
      %cst_26 = arith.constant dense<0.000000e+00> : vector<128x2xf32>
      %37 = tpu.matmul %33, %35, %cst_26 {dimension_numbers = #tpu.dot_dimension_numbers<[1], [0], [0], [1], [0, 0, 1, 1], [], []>} : vector<128x32xf32>, vector<32x2xf32>, vector<128x2xf32> -> vector<128x2xf32>
      %38 = vector.broadcast %36 : vector<1x2xf32> to vector<128x2xf32>
      %39 = arith.addf %37, %38 : vector<128x2xf32>
      %c0_27 = arith.constant 0 : index
      %c0_28 = arith.constant 0 : index
      %40 = vector.load %arg8[%c0_27, %c0_28] : memref<128x2xf32, #tpu.memory_space<vmem>>, vector<128x2xf32>
      tpu.vector_store %arg8[%c0_27, %c0_28], %39 {strides = array<i32>} : memref<128x2xf32, #tpu.memory_space<vmem>>, vector<128x2xf32>,
    } else {
    }
    return
  }
  func.func @transform_0(%arg0: i32, %arg1: i32) -> (i32, i32) {
    %c0_i32 = arith.constant 0 : i32
    %c0_i32_0 = arith.constant 0 : i32
    return %c0_i32, %arg0 : i32, i32
  }
  func.func @transform_1(%arg0: i32, %arg1: i32) -> (i32, i32) {
    %c0_i32 = arith.constant 0 : i32
    %c0_i32_0 = arith.constant 0 : i32
    return %arg0, %c0_i32 : i32, i32
  }
  func.func @transform_2(%arg0: i32, %arg1: i32) -> (i32, i32) {
    %c0_i32 = arith.constant 0 : i32
    %c0_i32_0 = arith.constant 0 : i32
    return %arg1, %c0_i32 : i32, i32
  }
  func.func @transform_3(%arg0: i32, %arg1: i32) -> (i32, i32) {
    %c0_i32 = arith.constant 0 : i32
    %c0_i32_0 = arith.constant 0 : i32
    %c0_i32_1 = arith.constant 0 : i32
    return %c0_i32, %c0_i32_0 : i32, i32
  }
  func.func @transform_4(%arg0: i32, %arg1: i32) -> (i32, i32) {
    %c0_i32 = arith.constant 0 : i32
    %c0_i32_0 = arith.constant 0 : i32
    %c0_i32_1 = arith.constant 0 : i32
    return %c0_i32, %c0_i32_0 : i32, i32
  }
  func.func @transform_5(%arg0: i32, %arg1: i32) -> (i32, i32) {
    %c0_i32 = arith.constant 0 : i32
    %c0_i32_0 = arith.constant 0 : i32
    return %arg0, %c0_i32 : i32, i32
  }
  func.func @transform_6(%arg0: i32, %arg1: i32) -> (i32, i32) {
    %c0_i32 = arith.constant 0 : i32
    %c0_i32_0 = arith.constant 0 : i32
    return %arg0, %c0_i32 : i32, i32
  }
}

</mosaic_0001>

<bundles_post_ra>
// kernel: mpnn_forward.2
= control target key start
LH: loop header
LB: loop body
LE: loop exit
PB: predicated region body
PF: predicated region fallthrough
CT: control target
= control target key end

     0   :  { %s1367_s21 = smov 0   ;;  %s1369_s22 = smov 0   ;;  %s1530_s0 = inlined_call_operand.vmem [shape: f32[96,8], index: 0, kind: input, shape index: {}]   ;;  %s1531_s1 = inlined_call_operand.vmem [shape: s32[1,256], index: 1, kind: input, shape index: {}]   ;;  %s1532_s2 = inlined_call_operand.vmem [shape: bf16[256,32], index: 2, kind: input, shape index: {}]   ;;  %s1533_s3 = inlined_call_operand.vmem [shape: f32[48,32], index: 3, kind: input, shape index: {}]   ;;  %s1534_s4 = inlined_call_operand.vmem [shape: f32[48,2], index: 4, kind: input, shape index: {}]   ;;  %s1535_s5 = inlined_call_operand.vmem [shape: bf16[96,32], index: 5, kind: output, shape index: {0}]   ;;  %s1536_s6 = inlined_call_operand.vmem [shape: f32[96,2], index: 6, kind: output, shape index: {1}]  }
   0x1   :  { %s1371_s23 = smov 0   ;;  %s1373_s24 = smov 0  }
   0x2   :  { %s1375_s25 = smov 0  }
   0x3 LB: > { %s26_s26 = sadd.s32 1, %s1320_s23  ;;  %s29_s27 = sadd.s32 1, %s1324_s24  ;;  %s1328_s25 = sphi %s1375_s25, %s17_s25   ;;  %s1324_s24 = sphi %s1373_s24, %s1541_s24   ;;  %s1320_s23 = sphi %s1371_s23, %s1540_s23   ;;  %s1316_s22 = sphi %s1369_s22, %s1539_s22   ;;  %s1312_s21 = sphi %s1367_s21, %s1538_s21  }
   0x4   : > { %p27_p0 = scmp.ge.s32.totalorder %s26_s26, 2  ;;  %p1057_p1 = scmp.ge.s32.totalorder %s1328_s25, 1 }
   0x5   : > { %p247_p2 = scmp.lt.s32.totalorder %s1328_s25, 7 }
   0x6   : > { %s1543_s26 = smov (%p27_p0, %s26_s26), 0  ;;  %s1545_s27 = smov (!%p27_p0, %s29_s27), %s1324_s24 }
   0x7   : > { %p248_p3 = pnand %p1057_p1, %p247_p2  ;;  %p31_p4 = scmp.ge.s32.totalorder %s1545_s27, 3 }
   0x8   : > { %s1058_s28 = sshll.u32 (!%p248_p3), %s1316_s22, 2  ;;  %p296_p5 = scmp.lt.s32.totalorder (!%p248_p3), %s1312_s21, 1 }
   0x9   : > { %s1547_s27 = smov (%p31_p4, %s1545_s27), 0  ;;  %251 = sbr.rel (%p248_p3) target bundleno = 732 (0x2dc), region = 40 }
   0xa   : > { %p291_p6 = scmp.lt.s32.totalorder (!%p248_p3), %s1058_s28, 11  ;;  %s1060_s29 = sshll.u32 (!%p248_p3), %s1312_s21, 4 }
   0xb   : > { %p300_p7 = scmp.lt.s32.totalorder (!%p248_p3), %s1060_s29, 31  ;;  %p1066_p8 = scmp.ne.s32.totalorder (!%p248_p3), %s1312_s21, 0 }
  0x10   : > { %s1405_s30 = scalar_select %p296_p5, %s1312_s21, 1 }
  0x11   : > { %s1549_s28 = smov (!%p291_p6, %s1058_s28), 11  ;;  %s1551_s29 = smov (!%p300_p7, %s1060_s29), 31 }
  0x12   : > { %s1059_s10 = sshll.u32 %s1549_s28, 3  ;;  %s1063_s11 = sshll.u32 %s1549_s28, 2  ;;  %vm322_vm0 = vcmask (!%p1066_p8), 261120   ;;  %v1330_v0 = vmov (!%p1066_p8), 0.0  }
  0x13   : > { %s1414_s14 = scalar_lea.vmem %s1530_s0, %s1059_s10  ;;  %s1419_s17 = scalar_lea.vmem %s1535_s5, %s1063_s11  ;;  %323 = vst.msk [vmem:[#allocation2] sm:$0xff] (!%p1066_p8), %vm322_vm0, %v1330_v0  ;;  %324 = vst.msk [vmem:[#allocation2 + $0x8] sm:$0xff] (!%p1066_p8), %vm322_vm0, %v1330_v0 }
  0x14   : > { %s1424_s20 = scalar_lea.vmem %s1536_s6, %s1059_s10  ;;  %s1061_s7 = sshll.u32 %s1551_s29, 2  ;;  %325 = vst.msk [vmem:[#allocation2 + $0x10] sm:$0xff] (!%p1066_p8), %vm322_vm0, %v1330_v0  ;;  %326 = vst.msk [vmem:[#allocation2 + $0x18] sm:$0xff] (!%p1066_p8), %vm322_vm0, %v1330_v0 }
  0x15   : > { %s1429_s28 = scalar_lea.vmem %s1532_s2, %s1061_s7  ;;  %321 = sbr.rel (%p1066_p8) target bundleno = 28 (0x1c), region = 44 }
  0x1c PF: > { %v1282_v1 = vld [vmem:[%s1429_s28] sm:$0xff]   ;;  %s1067_s29 = sshll.u32 %s1316_s22, 5  ;;  %v328_v2 = vlaneseq  ;;  %v1283_v3 = vld [vmem:[%s1429_s28 + $0x8] sm:$0xff]   ;;  %v1284_v6 = vld [vmem:[%s1429_s28 + $0x10] sm:$0xff]   ;;  %s1537_s22 = scalar_lea.vmem %s1531_s1, %s1405_s30  ;;  %v1331_v12 = vmov 1.0|1.0  }
  0x1d   : > { %1150 = vmatprep.subr.bf16.mxu0 %v1282_v1  ;;  %v333_v5 = vstv %s1067_s29  ;;  %v1285_v10 = vld [vmem:[%s1429_s28 + $0x18] sm:$0xff]   ;;  %v1068_v11 = vld [vmem:[%s1537_s22] ss:$0 sm:$0xff]  ;;  %v1287_v14 = vld [vmem:[%s1429_s28 + $0x28] sm:$0xff]   ;;  %vm478_vm7 = vcmask 261120   ;;  %p1085_p9 = scmp.ne.s32.totalorder %s1312_s21, 1 }
  0x1e   : > { %v329_v4 = vshrl.u32 %v328_v2, 7  ;;  %1151 = vmatpush3.bf16.msra.mxu0 %v1282_v1  ;;  %v1286_v13 = vld [vmem:[%s1429_s28 + $0x20] sm:$0xff]   ;;  %v1288_v15 = vld [vmem:[%s1429_s28 + $0x30] sm:$0xff]   ;;  %v1289_v18 = vld [vmem:[%s1429_s28 + $0x38] sm:$0xff]   ;;  %vm598_vm8 = vcmask (!%p1085_p9), 64512   ;;  %vm724_vm9 = vcmask (!%p1085_p9), 257024  }
  0x1f   : > { %1152 = vmatprep.subr.bf16.mxu0 %v1283_v3  ;;  %v359_v21 = vld [vmem:[#allocation2 + $0x10] sm:$0xff]  ;;  %v357_v22 = vld [vmem:[#allocation2] sm:$0xff]  ;;  %v360_v24 = vld [vmem:[#allocation2 + $0x18] sm:$0xff]  ;;  %vm925_vm10 = vcmask (!%p1085_p9), 15360  }
  0x20   : > { %v330_v7 = vadd.s32 8, %v329_v4  ;;  %v334_v8 = vadd.s32 %v333_v5, %v329_v4  ;;  %v331_v16 = vadd.s32 16, %v329_v4  ;;  %v332_v17 = vadd.s32 24, %v329_v4  ;;  %v358_v27 = vld [vmem:[#allocation2 + $0x8] sm:$0xff]  ;;  %v493_v34 = vld [vmem:[%s1533_s3 + $0x10] sm:$0xff] (!%p1085_p9)  ;;  %v494_v35 = vld [vmem:[%s1533_s3 + $0x18] sm:$0xff] (!%p1085_p9) }
  0x21   : > { %v492_v33 = vld [vmem:[%s1533_s3 + $0x8] sm:$0xff] (!%p1085_p9)  ;;  %v495_v37 = vld [vmem:[%s1533_s3 + $0x20] sm:$0xff] (!%p1085_p9)  ;;  %v489_v41 = vld [vmem:[%s1414_s14 + $0x10] sm:$0xff] (!%p1085_p9) }
  0x22   : > { %v335_v9 = vadd.s32 %v333_v5, %v330_v7  ;;  %1153 = vmatpush3.bf16.msra.mxu0 %v1283_v3  ;;  %vm343_vm1 = vcmp.eq.s32.totalorder %v334_v8, %v1068_v11  ;;  %v336_v19 = vadd.s32 %v333_v5, %v331_v16  ;;  %v337_v20 = vadd.s32 %v333_v5, %v332_v17  ;;  %v491_v40 = vld [vmem:[%s1533_s3] sm:$0xff] (!%p1085_p9)  ;;  %v490_v42 = vld [vmem:[%s1414_s14 + $0x18] sm:$0xff] (!%p1085_p9)  ;;  %v488_v47 = vld [vmem:[%s1414_s14 + $0x8] sm:$0xff] (!%p1085_p9) }
  0x23   : > { %1154 = vmatprep.subr.bf16.mxu0 %v1284_v6  ;;  %v1214_v36 = vpack.c.bf16 (!%p1085_p9), %v493_v34, %v492_v33  ;;  %v1218_v39 = vpack.c.bf16 (!%p1085_p9), %v495_v37, %v494_v35  ;;  %1230 = vmatprep.subr.mxu1 (!%p1085_p9), %v491_v40  ;;  %v733_v43 = vld [vmem:[%s1534_s4 + $0x20] sm:$0xff] (!%p1085_p9)  ;;  %v730_v50 = vld [vmem:[%s1534_s4 + $0x8] sm:$0xff] (!%p1085_p9)  ;;  %v731_v52 = vld [vmem:[%s1534_s4 + $0x10] sm:$0xff] (!%p1085_p9) }
  0x24   : > { %vm344_vm2 = vcmp.eq.s32.totalorder %v335_v9, %v1068_v11  ;;  %vm345_vm4 = vcmp.eq.s32.totalorder %v336_v19, %v1068_v11  ;;  %vm346_vm5 = vcmp.eq.s32.totalorder %v337_v20, %v1068_v11  ;;  %1231 = vmatpush3.msra.mxu1 (!%p1085_p9), %v491_v40  ;;  %1189 = vmatprep.mubr.msk.f32.mxu1 (!%p1085_p9), %vm598_vm8, %v489_v41  ;;  %v487_v44 = vld [vmem:[%s1414_s14] sm:$0xff] (!%p1085_p9)  ;;  %v732_v53 = vld [vmem:[%s1534_s4 + $0x18] sm:$0xff] (!%p1085_p9)  ;;  %v1094_v58 = vld [vmem:[%s1533_s3 + $0x28] ss:$0 sm:$0xff] (!%p1085_p9) }
  0x25   : > { %vm1081_vm3 = vmpackc.low %vm344_vm2, %vm343_vm1  ;;  %1190 = vmatmul.mubr.msk.f32.vlgmr.msra.gmra.mrb[0].mxu1 (!%p1085_p9), %vm598_vm8, %v490_v42  ;;  %1192 = vmatprep.subr.mxu1 (!%p1085_p9), %v733_v43  ;;  %v729_v49 = vld [vmem:[%s1534_s4] sm:$0xff] (!%p1085_p9)  ;;  %v1226_v54 = vpack.c.bf16 (!%p1085_p9), %v732_v53, %v731_v52 }
  0x26   : > { %1155 = vmatpush3.bf16.msra.mxu0 %v1284_v6  ;;  %1166 = vmatprep.mubr.msk.bf16.mxu0 %vm1081_vm3, %v1331_v12  ;;  %vm1083_vm6 = vmpackc.low %vm346_vm5, %vm345_vm4  ;;  %v1222_v51 = vpack.c.bf16 (!%p1085_p9), %v730_v50, %v729_v49 }
  0x27   : > { %1156 = vmatprep.subr.bf16.mxu0 %v1285_v10  ;;  %1193 = vmatpush3.msra.mxu1 (!%p1085_p9), %v733_v43 }
  0x28   : > { %1194 = vmatprep.mubr.msk.f32.mxu1 (!%p1085_p9), %vm598_vm8, %v487_v44  ;;  %1223 = vmatprep.subr.bf16.mxu1 (!%p1085_p9), %v1222_v51 }
  0x29   : > { %1195 = vmatmul.mubr.msk.f32.vlgmr.msra.gmra.mrb[2].mxu1 (!%p1085_p9), %vm598_vm8, %v488_v47 }
  0x2a   : > { %1157 = vmatpush3.bf16.msra.mxu0 %v1285_v10  ;;  %1197 = vmatprep.mubr.msk.f32.mxu1 (!%p1085_p9), %vm598_vm8, %v489_v41 }
  0x2b   : > { %1158 = vmatprep.subr.bf16.mxu0 %v1286_v13  ;;  %1225 = vmatpush3.bf16.msra.mxu1 (!%p1085_p9), %v1222_v51 }
  0x2c   : > { %1227 = vmatprep.subr.bf16.mxu1 (!%p1085_p9), %v1226_v54 }
  0x2d   : > { %1198 = vmatmul.mubr.msk.f32.gmra.mrb[4].mxu1 (!%p1085_p9), %vm598_vm8, %v490_v42 }
  0x2e   : > { %1159 = vmatpush3.bf16.msra.mxu0 %v1286_v13 }
  0x2f   : > { %1160 = vmatprep.subr.bf16.mxu0 %v1287_v14  ;;  %1229 = vmatpush3.bf16.msra.mxu1 (!%p1085_p9), %v1226_v54 }
  0x32   : > { %1161 = vmatpush3.bf16.msra.mxu0 %v1287_v14 }
  0x33   : > { %1162 = vmatprep.subr.bf16.mxu0 %v1288_v15 }
  0x36   : > { %1163 = vmatpush3.bf16.msra.mxu0 %v1288_v15 }
  0x37   : > { %1164 = vmatprep.subr.bf16.mxu0 %v1289_v18 }
  0x3a   : > { %1165 = vmatpush3.bf16.msra.mxu0 %v1289_v18 }
  0x3b   : > { %1215 = vmatprep.subr.bf16.mxu0 (!%p1085_p9), %v1214_v36 }
  0x3d   : > { %1167 = vmatmul.mubr.msk.bf16.vlgmr.msra.gmra.mrb[0].mxu0 %vm1083_vm6, %v1331_v12  ;;  %v1107_v12 = vld [vmem:[%s1534_s4 + $0x28] ss:$0 sm:$0xff] (!%p1085_p9) }
  0x3e   : > { %1217 = vmatpush3.bf16.msra.mxu0 (!%p1085_p9), %v1214_v36 }
  0x3f   : > { %1219 = vmatprep.subr.bf16.mxu0 (!%p1085_p9), %v1218_v39 }
  0x42   : > { %1221 = vmatpush3.bf16.msra.mxu0 (!%p1085_p9), %v1218_v39 }
  0x43   : > { %1184 = vmatprep.subr.mxu0 (!%p1085_p9), %v491_v40 }
  0xf8   : > { %v1191_v55 = vpop.f32.mrb[0].mxu1 (!%p1085_p9) }
  0xf9   : > { %v687_v56 = vpop.f32.mrb[1].mxu1 (!%p1085_p9) }
 0x110   : > { %v1168_v23 = vpop.f32.mrb[0].mxu0  ;;  %486 = sbr.rel (%p1085_p9) target bundleno = 732 (0x2dc), region = 48 }
 0x111   : > { %v476_v25 = vadd.f32 %v1168_v23, %v359_v21  ;;  %v459_v26 = vpop.f32.mrb[1].mxu0 }
 0x112   : > { %v474_v28 = vadd.f32 %v459_v26, %v357_v22  ;;  %v1169_v29 = vpop.f32.mrb[2].mxu0 }
 0x113   : > { %481 = vst.msk [vmem:[#allocation2 + $0x10] sm:$0xff] %vm478_vm7, %v476_v25  ;;  %v477_v30 = vadd.f32 %v1169_v29, %v360_v24  ;;  %v462_v31 = vpop.f32.mrb[3].mxu0 }
 0x114   : > { %479 = vst.msk [vmem:[#allocation2] sm:$0xff] %vm478_vm7, %v474_v28  ;;  %v475_v32 = vadd.f32 %v462_v31, %v358_v27 }
 0x115   : > { %482 = vst.msk [vmem:[#allocation2 + $0x18] sm:$0xff] %vm478_vm7, %v477_v30 }
 0x116   : > { %480 = vst.msk [vmem:[#allocation2 + $0x8] sm:$0xff] %vm478_vm7, %v475_v32 }
 0x11a   : > { %v499_v46 = vld [vmem:[#allocation2 + $0x10] sm:$0xff] }
 0x11b   : > { %v497_v38 = vld [vmem:[#allocation2] sm:$0xff] }
 0x11c   : > { %1178 = vmatprep.mubr.msk.f32.mxu0 %vm478_vm7, %v497_v38  ;;  %v500_v48 = vld [vmem:[#allocation2 + $0x18] sm:$0xff] }
 0x11d   : > { %v498_v45 = vld [vmem:[#allocation2 + $0x8] sm:$0xff] }
 0x11e   : > { %1179 = vmatmul.mubr.msk.f32.vlgmr.msra.gmra.mrb[0].mxu0 %vm478_vm7, %v498_v45 }
 0x11f   : > { %1185 = vmatpush3.msra.mxu0 %v491_v40  ;;  %1181 = vmatprep.mubr.msk.f32.mxu0 %vm478_vm7, %v499_v46 }
 0x122   : > { %1182 = vmatmul.mubr.msk.f32.gmra.mrb[2].mxu0 %vm478_vm7, %v500_v48 }
 0x123   : > { %1186 = vmatprep.mubr.msk.f32.mxu0 %vm598_vm8, %v487_v44 }
 0x126   : > { %1187 = vmatmul.mubr.msk.f32.vlgmr.msra.gmra.mrb[0].mxu0 %vm598_vm8, %v488_v47 }
 0x1f5   : > { %v1183_v57 = vpop.f32.mrb[2].mxu0 }
 0x1f6   : > { %v693_v59 = vadd.f32 %v1191_v55, %v1183_v57  ;;  %v589_v60 = vpop.f32.mrb[3].mxu0 }
 0x1f7   : > { %v688_v61 = vadd.f32 %v687_v56, %v589_v60 }
 0x1f8   : > { %v703_v62 = vadd.f32 %v1094_v58, %v693_v59 }
 0x1f9   : > { %v702_v63 = vadd.f32 %v1094_v58, %v688_v61  ;;  %v1188_v0 = vpop.f32.mrb[0].mxu0 }
 0x1fa   : > { %v707_v1 = vmax.f32 %v703_v62, 0.0  ;;  %v701_v2 = vadd.f32 %v1188_v0, %v1094_v58  ;;  %v677_v3 = vpop.f32.mrb[1].mxu0 }
 0x1fb   : > { %v706_v4 = vmax.f32 %v702_v63, 0.0  ;;  %v700_v5 = vadd.f32 %v1094_v58, %v677_v3 }
 0x1fc   : > { %v1113_v6 = vpack.c.bf16 %v707_v1, %v707_v1  ;;  %v705_v7 = vmax.f32 %v701_v2, 0.0 }
 0x1fd   : > { %v1112_v8 = vpack.c.bf16 %v706_v4, %v706_v4  ;;  %v704_v9 = vmax.f32 %v700_v5, 0.0 }
 0x1fe   : > { %728 = vst.msk [vmem:[%s1419_s17 + $0xc] sm:$0xf] %vm724_vm9, %v1113_v6  ;;  %v1111_v10 = vpack.c.bf16 %v705_v7, %v705_v7 }
 0x1ff   : > { %727 = vst.msk [vmem:[%s1419_s17 + $0x8] sm:$0xf] %vm724_vm9, %v1112_v8  ;;  %v1110_v11 = vpack.c.bf16 %v704_v9, %v704_v9  ;;  %1208 = vmatprep.mubr.msk.f32.mxu1 %vm478_vm7, %v704_v9 }
 0x200   : > { %726 = vst.msk [vmem:[%s1419_s17 + $0x4] sm:$0xf] %vm724_vm9, %v1111_v10  ;;  %1209 = vmatmul.mubr.msk.f32.vlgmr.msra.gmra.mrb[2].mxu1 %vm478_vm7, %v705_v7 }
 0x201   : > { %725 = vst.msk [vmem:[%s1419_s17] sm:$0xf] %vm724_vm9, %v1110_v11  ;;  %1211 = vmatprep.mubr.msk.f32.mxu1 %vm478_vm7, %v706_v4 }
 0x204   : > { %1212 = vmatmul.mubr.msk.f32.gmra.mrb[4].mxu1 %vm478_vm7, %v707_v1 }
 0x2d3   : > { %v1210_v13 = vpop.f32.mrb[2].mxu1 }
 0x2d4   : > { %v922_v14 = vadd.f32 %v1210_v13, %v1107_v12  ;;  %v898_v15 = vpop.f32.mrb[3].mxu1 }
 0x2d5   : > { %v921_v16 = vadd.f32 %v1107_v12, %v898_v15 }
 0x2d6   : > { %927 = vst.msk [vmem:[%s1424_s20 + $0x8] sm:$0xff] %vm925_vm10, %v922_v14 }
 0x2d7   : > { %926 = vst.msk [vmem:[%s1424_s20] sm:$0xff] %vm925_vm10, %v921_v16  ;;  %v1213_v17 = vpop.f32.mrb[4].mxu1 }
 0x2d8   : > { %v924_v18 = vadd.f32 %v1213_v17, %v1107_v12  ;;  %v908_v19 = vpop.f32.mrb[5].mxu1 }
 0x2d9   : > { %v923_v20 = vadd.f32 %v1107_v12, %v908_v19 }
 0x2da   : > { %929 = vst.msk [vmem:[%s1424_s20 + $0x18] sm:$0xff] %vm925_vm10, %v924_v18 }
 0x2db   : > { %928 = vst.msk [vmem:[%s1424_s20 + $0x10] sm:$0xff] %vm925_vm10, %v923_v20 }
 0x2dc PF: > { %s17_s25 = sadd.s32 1, %s1328_s25   ;;  %s1538_s21 = smov %s1320_s23 }
 0x2dd   : > { %p14_p10 = scmp.ge.s32.totalorder %s17_s25, 8   ;;  %s1539_s22 = smov %s1324_s24 }
 0x2de   : > { %s1540_s23 = smov %s1543_s26  ;;  %s1541_s24 = smov %s1547_s27 }
 0x2df   :  { %16 = sbr.rel (!%p14_p10) target bundleno = 3 (0x3), region = 96 }

// kernel: mpnn_forward.3
= control target key start
LH: loop header
LB: loop body
LE: loop exit
PB: predicated region body
PF: predicated region fallthrough
CT: control target
= control target key end

     0   :  { %s1863_s21 = smov 0   ;;  %s1865_s22 = smov 0   ;;  %s2175_s0 = inlined_call_operand.vmem [shape: s32[1,256], index: 0, kind: input, shape index: {}]   ;;  %s2176_s1 = inlined_call_operand.vmem [shape: bf16[256,32], index: 1, kind: input, shape index: {}]   ;;  %s2177_s2 = inlined_call_operand.vmem [shape: bf16[96,32], index: 2, kind: input, shape index: {}]   ;;  %s2178_s3 = inlined_call_operand.vmem [shape: f32[72,32], index: 3, kind: input, shape index: {}]   ;;  %s2179_s4 = inlined_call_operand.vmem [shape: f32[40,2], index: 4, kind: input, shape index: {}]   ;;  %s2180_s5 = inlined_call_operand.vmem [shape: f32[256,32], index: 5, kind: output, shape index: {0}]   ;;  %s2181_s6 = inlined_call_operand.vmem [shape: f32[256,2], index: 6, kind: output, shape index: {1}]  }
   0x1   :  { %s1867_s23 = smov 0   ;;  %s1869_s24 = smov 0  }
   0x2   :  { %s1871_s25 = smov 0  }
   0x3 LB: > { %s26_s26 = sadd.s32 1, %s1816_s23  ;;  %s29_s27 = sadd.s32 1, %s1820_s24  ;;  %s1824_s25 = sphi %s1871_s25, %s17_s25   ;;  %s1820_s24 = sphi %s1869_s24, %s2185_s24   ;;  %s1816_s23 = sphi %s1867_s23, %s2184_s23   ;;  %s1812_s22 = sphi %s1865_s22, %s2183_s22   ;;  %s1808_s21 = sphi %s1863_s21, %s2182_s21  }
   0x4   : > { %p27_p0 = scmp.ge.s32.totalorder %s26_s26, 6  ;;  %p1398_p1 = scmp.ge.s32.totalorder %s1824_s25, 1 }
   0x5   : > { %p247_p2 = scmp.lt.s32.totalorder %s1824_s25, 13 }
   0x6   : > { %s2187_s26 = smov (%p27_p0, %s26_s26), 0  ;;  %s2189_s27 = smov (!%p27_p0, %s29_s27), %s1820_s24 }
   0x7   : > { %p248_p3 = pnand %p1398_p1, %p247_p2  ;;  %p31_p4 = scmp.ge.s32.totalorder %s2189_s27, 2 }
   0x8   : > { %p290_p5 = scmp.lt.s32.totalorder (!%p248_p3), %s1812_s22, 1  ;;  %s1399_s28 = sshll.u32 (!%p248_p3), %s1812_s22, 4 }
   0x9   : > { %s2191_s27 = smov (%p31_p4, %s2189_s27), 0  ;;  %251 = sbr.rel (%p248_p3) target bundleno = 843 (0x34b), region = 40 }
   0xa   : > { %p294_p6 = scmp.lt.s32.totalorder (!%p248_p3), %s1399_s28, 31  ;;  %s1401_s29 = sshll.u32 (!%p248_p3), %s1808_s21, 1 }
   0xb   : > { %p300_p7 = scmp.lt.s32.totalorder (!%p248_p3), %s1401_s29, 11  ;;  %p1407_p8 = scmp.ne.s32.totalorder (!%p248_p3), %s1808_s21, 0 }
  0x10   : > { %s2193_s22 = smov (!%p290_p5, %s1812_s22), 1  ;;  %s2195_s28 = smov (!%p294_p6, %s1399_s28), 31 }
  0x11   : > { %s292_s8 = scalar_lea.vmem %s2175_s0, %s2193_s22  ;;  %s1400_s9 = sshll.u32 %s2195_s28, 2  ;;  %vm322_vm0 = vcmask (!%p1407_p8), 261120   ;;  %v1826_v0 = vmov (!%p1407_p8), 0.0  }
  0x12   : > { %s1404_s10 = sshll.u32 %s2195_s28, 3  ;;  %s1905_s13 = scalar_lea.vmem %s2176_s1, %s1400_s9  ;;  %323 = vst.msk [vmem:[#allocation2] sm:$0xff] (!%p1407_p8), %vm322_vm0, %v1826_v0  ;;  %324 = vst.msk [vmem:[#allocation2 + $0x8] sm:$0xff] (!%p1407_p8), %vm322_vm0, %v1826_v0 }
  0x13   : > { %s1910_s16 = scalar_lea.vmem %s2180_s5, %s1404_s10  ;;  %s2197_s29 = smov (!%p300_p7, %s1401_s29), 11  ;;  %325 = vst.msk [vmem:[#allocation2 + $0x10] sm:$0xff] (!%p1407_p8), %vm322_vm0, %v1826_v0  ;;  %326 = vst.msk [vmem:[#allocation2 + $0x18] sm:$0xff] (!%p1407_p8), %vm322_vm0, %v1826_v0 }
  0x14   : > { %s1915_s19 = scalar_lea.vmem %s2181_s6, %s1404_s10  ;;  %s1402_s20 = sshll.u32 %s2197_s29, 2  ;;  %327 = vst.msk [vmem:[#allocation2 + $0x20] sm:$0xff] (!%p1407_p8), %vm322_vm0, %v1826_v0  ;;  %328 = vst.msk [vmem:[#allocation2 + $0x28] sm:$0xff] (!%p1407_p8), %vm322_vm0, %v1826_v0 }
  0x15   : > { %s303_s28 = scalar_lea.vmem %s2177_s2, %s1402_s20  ;;  %321 = sbr.rel (%p1407_p8) target bundleno = 28 (0x1c), region = 44  ;;  %329 = vst.msk [vmem:[#allocation2 + $0x30] sm:$0xff] (!%p1407_p8), %vm322_vm0, %v1826_v0  ;;  %330 = vst.msk [vmem:[#allocation2 + $0x38] sm:$0xff] (!%p1407_p8), %vm322_vm0, %v1826_v0 }
  0x16   : > { %331 = vst.msk [vmem:[#allocation2 + $0x40] sm:$0xff] (!%p1407_p8), %vm322_vm0, %v1826_v0  ;;  %332 = vst.msk [vmem:[#allocation2 + $0x48] sm:$0xff] (!%p1407_p8), %vm322_vm0, %v1826_v0 }
  0x17   : > { %333 = vst.msk [vmem:[#allocation2 + $0x50] sm:$0xff] (!%p1407_p8), %vm322_vm0, %v1826_v0  ;;  %334 = vst.msk [vmem:[#allocation2 + $0x58] sm:$0xff] (!%p1407_p8), %vm322_vm0, %v1826_v0 }
  0x18   : > { %335 = vst.msk [vmem:[#allocation2 + $0x60] sm:$0xff] (!%p1407_p8), %vm322_vm0, %v1826_v0  ;;  %336 = vst.msk [vmem:[#allocation2 + $0x68] sm:$0xff] (!%p1407_p8), %vm322_vm0, %v1826_v0 }
  0x19   : > { %337 = vst.msk [vmem:[#allocation2 + $0x70] sm:$0xff] (!%p1407_p8), %vm322_vm0, %v1826_v0  ;;  %338 = vst.msk [vmem:[#allocation2 + $0x78] sm:$0xff] (!%p1407_p8), %vm322_vm0, %v1826_v0 }
  0x1c PF: > { %s1408_s29 = sshll.u32 %s1808_s21, 4  ;;  %v340_v1 = vlaneseq  ;;  %v1785_v3 = vld [vmem:[%s303_s28] sm:$0xff]   ;;  %v1827_v9 = vmov 0.0   ;;  %vm398_vm3 = vcmask 130048   ;;  %v360_v21 = vld [vmem:[#allocation2 + $0x10] sm:$0xff]  ;;  %vm536_vm4 = vcmask 261120  }
  0x1d   : > { %v343_v2 = vstv %s1408_s29  ;;  %v1409_v5 = vld [vmem:[%s292_s8] ss:$0 sm:$0xff]  ;;  %1582 = vmatprep.subr.bf16.mxu0 %v1785_v3  ;;  %1720 = vmatprep.subr.bf16.mxu1 %v1785_v3  ;;  %v361_v24 = vld [vmem:[#allocation2 + $0x18] sm:$0xff]  ;;  %v359_v27 = vld [vmem:[#allocation2 + $0x8] sm:$0xff]  ;;  %p1421_p9 = scmp.ne.s32.totalorder %s1808_s21, 5 }
  0x1e   : > { %v341_v4 = vshrl.u32 %v340_v1, 7  ;;  %1583 = vmatpush3.bf16.msra.mxu0 %v1785_v3  ;;  %1721 = vmatpush3.bf16.msra.mxu1 %v1785_v3  ;;  %v358_v22 = vld [vmem:[#allocation2] sm:$0xff]  ;;  %v364_v33 = vld [vmem:[#allocation2 + $0x30] sm:$0xff]  ;;  %v365_v36 = vld [vmem:[#allocation2 + $0x38] sm:$0xff]  ;;  %vm1254_vm5 = vcmask (!%p1421_p9), 15360  }
  0x1f   : > { %v362_v34 = vld [vmem:[#allocation2 + $0x20] sm:$0xff]  ;;  %v363_v39 = vld [vmem:[#allocation2 + $0x28] sm:$0xff]  ;;  %v368_v45 = vld [vmem:[#allocation2 + $0x50] sm:$0xff] }
  0x20   : > { %v342_v6 = vadd.s32 8, %v341_v4  ;;  %v344_v7 = vadd.s32 %v343_v2, %v341_v4  ;;  %v366_v46 = vld [vmem:[#allocation2 + $0x40] sm:$0xff]  ;;  %v369_v48 = vld [vmem:[#allocation2 + $0x58] sm:$0xff]  ;;  %v367_v51 = vld [vmem:[#allocation2 + $0x48] sm:$0xff] }
  0x21   : > { %v372_v57 = vld [vmem:[#allocation2 + $0x70] sm:$0xff]  ;;  %v370_v58 = vld [vmem:[#allocation2 + $0x60] sm:$0xff]  ;;  %v373_v60 = vld [vmem:[#allocation2 + $0x78] sm:$0xff] }
  0x22   : > { %v345_v8 = vadd.s32 %v343_v2, %v342_v6  ;;  %vm351_vm1 = vcmp.eq.s32.totalorder %v344_v7, %v1409_v5  ;;  %v371_v63 = vld [vmem:[#allocation2 + $0x68] sm:$0xff]  ;;  %v563_v7 = vld [vmem:[%s2178_s3 + $0x30] sm:$0xff] (!%p1421_p9) }
  0x23   : > { %v1410_v10 = vsel %vm351_vm1, 1.0, %v1827_v9  ;;  %v562_v6 = vld [vmem:[%s2178_s3 + $0x28] sm:$0xff] (!%p1421_p9) }
  0x24   : > { %vm352_vm2 = vcmp.eq.s32.totalorder %v345_v8, %v1409_v5  ;;  %v561_v5 = vld [vmem:[%s2178_s3 + $0x20] sm:$0xff] (!%p1421_p9) }
  0x25   : > { %v1411_v11 = vsel %vm352_vm2, 1.0, %v1827_v9  ;;  %v1696_v8 = vpack.c.bf16 (!%p1421_p9), %v562_v6, %v561_v5  ;;  %v564_v9 = vld [vmem:[%s2178_s3 + $0x38] sm:$0xff] (!%p1421_p9)  ;;  %v2051_v5 = vld [vmem:[%s2178_s3 + $0x40] ss:$0 sm:$0xff] (!%p1421_p9) }
  0x26   : > { %v357_v12 = vpack.c.bf16 %v1411_v11, %v1410_v10  ;;  %v1475_v10 = vld [vmem:[%s1905_s13] sm:$0xff] (!%p1421_p9)   ;;  %v1700_v11 = vpack.c.bf16 (!%p1421_p9), %v564_v9, %v563_v7 }
  0x27   : > { %1697 = vmatprep.subr.bf16.mxu0 (!%p1421_p9), %v1696_v8  ;;  %1722 = vmatprep.subr.bf16.mxu1 (!%p1421_p9), %v1696_v8 }
  0x28   : > { %376 = vxpose.xlu0.c.b16.start.end [1/1] (short) %v357_v12, 128  ;;  %v1476_v12 = vunpack.c.l.bf16 (!%p1421_p9), %v1475_v10 }
  0x8e   : > { %v384_v13 = vpop.trf.xlu0 }
  0x8f   : > { %1584 = vmatprep.mubr.msk.bf16.mxu0 %vm398_vm3, %v384_v13  ;;  %v557_v13 = vld [vmem:[%s2178_s3] sm:$0xff] (!%p1421_p9) }
  0x92   : > { %v385_v14 = vpop.trf.xlu0 }
  0x93   : > { %1585 = vmatmul.mubr.msk.bf16.vlgmr.msra.gmra.mrb[0].mxu0 %vm398_vm3, %v385_v14  ;;  %v558_v14 = vld [vmem:[%s2178_s3 + $0x8] sm:$0xff] (!%p1421_p9) }
  0x94   : > { %1699 = vmatpush3.bf16.msra.mxu0 (!%p1421_p9), %v1696_v8 }
  0x95   : > { %1701 = vmatprep.subr.bf16.mxu0 (!%p1421_p9), %v1700_v11 }
  0x96   : > { %v386_v15 = vpop.trf.xlu0 }
  0x97   : > { %1588 = vmatprep.mubr.msk.bf16.mxu0 %vm398_vm3, %v386_v15  ;;  %v1704_v15 = vpack.c.bf16 (!%p1421_p9), %v558_v14, %v557_v13 }
  0x98   : > { %1703 = vmatpush3.bf16.msra.mxu0 (!%p1421_p9), %v1700_v11 }
  0x99   : > { %1705 = vmatprep.subr.bf16.mxu0 (!%p1421_p9), %v1704_v15 }
  0x9a   : > { %v387_v16 = vpop.trf.xlu0 }
  0x9b   : > { %1589 = vmatmul.mubr.msk.bf16.gmra.mrb[4].mxu0 %vm398_vm3, %v387_v16  ;;  %v1506_v16 = vld [vmem:[%s1905_s13 + $0x8] sm:$0xff] (!%p1421_p9)  }
  0x9c   : > { %1608 = vmatprep.mubr.msk.f32.mxu0 (!%p1421_p9), %vm536_vm4, %v1476_v12 }
  0x9e   : > { %v388_v17 = vpop.trf.xlu0 }
  0x9f   : > { %1592 = vmatprep.mubr.msk.bf16.mxu1 %vm398_vm3, %v388_v17  ;;  %v559_v17 = vld [vmem:[%s2178_s3 + $0x10] sm:$0xff] (!%p1421_p9) }
  0xa2   : > { %v389_v18 = vpop.trf.xlu0 }
  0xa3   : > { %1593 = vmatmul.mubr.msk.bf16.vlgmr.msra.gmra.mrb[0].mxu1 %vm398_vm3, %v389_v18  ;;  %v560_v18 = vld [vmem:[%s2178_s3 + $0x18] sm:$0xff] (!%p1421_p9) }
  0xa4   : > { %1724 = vmatpush3.bf16.msra.mxu1 (!%p1421_p9), %v1696_v8 }
  0xa5   : > { %1723 = vmatprep.subr.bf16.mxu1 (!%p1421_p9), %v1700_v11 }
  0xa6   : > { %v390_v19 = vpop.trf.xlu0 }
  0xa7   : > { %1596 = vmatprep.mubr.msk.bf16.mxu1 %vm398_vm3, %v390_v19  ;;  %v1509_v19 = vld [vmem:[%s1905_s13 + $0x20] sm:$0xff] (!%p1421_p9)  }
  0xa8   : > { %1725 = vmatpush3.bf16.msra.mxu1 (!%p1421_p9), %v1700_v11 }
  0xaa   : > { %v391_v20 = vpop.trf.xlu0 }
  0xab   : > { %1597 = vmatmul.mubr.msk.bf16.gmra.mrb[4].mxu1 %vm398_vm3, %v391_v20  ;;  %v1477_v20 = vunpack.c.h.bf16 (!%p1421_p9), %v1475_v10 }
 0x166   : > { %v1586_v23 = vpop.f32.mrb[0].mxu0 }
 0x167   : > { %v522_v25 = vadd.f32 %v1586_v23, %v360_v21  ;;  %v457_v26 = vpop.f32.mrb[1].mxu0  ;;  %v1492_v21 = vunpack.c.l.bf16 (!%p1421_p9), %v1509_v19  ;;  %v1480_v23 = vunpack.c.l.bf16 (!%p1421_p9), %v1506_v16  ;;  %1609 = vmatmul.mubr.msk.f32.vlgmr.msra.gmra.mrb[0].mxu0 (!%p1421_p9), %vm536_vm4, %v1477_v20 }
 0x168   : > { %v520_v28 = vadd.f32 %v457_v26, %v358_v22  ;;  %v1587_v29 = vpop.f32.mrb[2].mxu0  ;;  %v1510_v22 = vld [vmem:[%s1905_s13 + $0x28] sm:$0xff] (!%p1421_p9)   ;;  %v1493_v26 = vunpack.c.h.bf16 (!%p1421_p9), %v1509_v19  ;;  %1707 = vmatpush3.bf16.msra.mxu0 (!%p1421_p9), %v1704_v15 }
 0x169   : > { %539 = vst.msk [vmem:[#allocation2 + $0x10] sm:$0xff] %vm536_vm4, %v522_v25  ;;  %v523_v30 = vadd.f32 %v1587_v29, %v361_v24  ;;  %v460_v31 = vpop.f32.mrb[3].mxu0  ;;  %v1507_v24 = vld [vmem:[%s1905_s13 + $0x10] sm:$0xff] (!%p1421_p9)   ;;  %v1708_v25 = vpack.c.bf16 (!%p1421_p9), %v560_v18, %v559_v17  ;;  %1620 = vmatprep.mubr.msk.f32.mxu1 (!%p1421_p9), %vm536_vm4, %v1492_v21  ;;  %v1481_v29 = vunpack.c.h.bf16 (!%p1421_p9), %v1506_v16  ;;  %1611 = vmatprep.mubr.msk.f32.mxu0 (!%p1421_p9), %vm536_vm4, %v1480_v23 }
 0x16a   : > { %537 = vst.msk [vmem:[#allocation2] sm:$0xff] %vm536_vm4, %v520_v28  ;;  %v521_v32 = vadd.f32 %v460_v31, %v359_v27  ;;  %v1496_v27 = vunpack.c.l.bf16 (!%p1421_p9), %v1510_v22  ;;  %v1052_v28 = vld [vmem:[%s2179_s4] sm:$0xff] (!%p1421_p9)  ;;  %v1053_v31 = vld [vmem:[%s2179_s4 + $0x8] sm:$0xff] (!%p1421_p9) }
 0x16b   : > { %540 = vst.msk [vmem:[#allocation2 + $0x18] sm:$0xff] %vm536_vm4, %v523_v30  ;;  %v1511_v30 = vld [vmem:[%s1905_s13 + $0x30] sm:$0xff] (!%p1421_p9)   ;;  %1709 = vmatprep.subr.bf16.mxu0 (!%p1421_p9), %v1708_v25  ;;  %1612 = vmatmul.mubr.msk.f32.gmra.mrb[2].mxu0 (!%p1421_p9), %vm536_vm4, %v1481_v29 }
 0x16c   : > { %538 = vst.msk [vmem:[#allocation2 + $0x8] sm:$0xff] %vm536_vm4, %v521_v32  ;;  %v1484_v32 = vunpack.c.l.bf16 (!%p1421_p9), %v1507_v24  ;;  %1711 = vmatpush3.bf16.msra.mxu0 (!%p1421_p9), %v1708_v25 }
 0x16e   : > { %v1590_v35 = vpop.f32.mrb[4].mxu0  ;;  %1614 = vmatprep.mubr.msk.f32.mxu0 (!%p1421_p9), %vm536_vm4, %v1484_v32 }
 0x16f   : > { %v526_v37 = vadd.f32 %v1590_v35, %v364_v33  ;;  %v473_v38 = vpop.f32.mrb[5].mxu0  ;;  %v1712_v33 = vpack.c.bf16 (!%p1421_p9), %v1053_v31, %v1052_v28  ;;  %v1497_v35 = vunpack.c.h.bf16 (!%p1421_p9), %v1510_v22 }
 0x170   : > { %v524_v40 = vadd.f32 %v473_v38, %v362_v34  ;;  %v1591_v41 = vpop.f32.mrb[6].mxu0  ;;  %v1508_v34 = vld [vmem:[%s1905_s13 + $0x18] sm:$0xff] (!%p1421_p9)  }
 0x171   : > { %543 = vst.msk [vmem:[#allocation2 + $0x30] sm:$0xff] %vm536_vm4, %v526_v37  ;;  %v527_v42 = vadd.f32 %v1591_v41, %v365_v36  ;;  %v476_v43 = vpop.f32.mrb[7].mxu0  ;;  %v1500_v36 = vunpack.c.l.bf16 (!%p1421_p9), %v1511_v30  ;;  %1713 = vmatprep.subr.bf16.mxu1 (!%p1421_p9), %v1712_v33  ;;  %v1485_v37 = vunpack.c.h.bf16 (!%p1421_p9), %v1507_v24  ;;  %v1512_v38 = vld [vmem:[%s1905_s13 + $0x38] sm:$0xff] (!%p1421_p9)  }
 0x172   : > { %541 = vst.msk [vmem:[#allocation2 + $0x20] sm:$0xff] %vm536_vm4, %v524_v40  ;;  %v525_v44 = vadd.f32 %v476_v43, %v363_v39  ;;  %v1488_v39 = vunpack.c.l.bf16 (!%p1421_p9), %v1508_v34  ;;  %v1501_v40 = vunpack.c.h.bf16 (!%p1421_p9), %v1511_v30  ;;  %v1504_v41 = vunpack.c.l.bf16 (!%p1421_p9), %v1512_v38  ;;  %v598_v43 = vld [vmem:[#allocation2] sm:$0xff] (!%p1421_p9) }
 0x173   : > { %544 = vst.msk [vmem:[#allocation2 + $0x38] sm:$0xff] %vm536_vm4, %v527_v42  ;;  %1615 = vmatmul.mubr.msk.f32.gmra.mrb[4].mxu0 (!%p1421_p9), %vm536_vm4, %v1485_v37  ;;  %v1489_v42 = vunpack.c.h.bf16 (!%p1421_p9), %v1508_v34 }
 0x174   : > { %542 = vst.msk [vmem:[#allocation2 + $0x28] sm:$0xff] %vm536_vm4, %v525_v44  ;;  %1617 = vmatprep.mubr.msk.f32.mxu0 (!%p1421_p9), %vm536_vm4, %v1488_v39  ;;  %v1505_v44 = vunpack.c.h.bf16 (!%p1421_p9), %v1512_v38 }
 0x176   : > { %v1594_v47 = vpop.f32.mrb[0].mxu1 }
 0x177   : > { %v530_v49 = vadd.f32 %v1594_v47, %v368_v45  ;;  %v489_v50 = vpop.f32.mrb[1].mxu1  ;;  %1621 = vmatmul.mubr.msk.f32.vlgmr.msra.gmra.mrb[0].mxu1 (!%p1421_p9), %vm536_vm4, %v1493_v26  ;;  %1618 = vmatmul.mubr.msk.f32.gmra.mrb[6].mxu0 (!%p1421_p9), %vm536_vm4, %v1489_v42  ;;  %v599_v45 = vld [vmem:[#allocation2 + $0x8] sm:$0xff] (!%p1421_p9)  ;;  %v601_v47 = vld [vmem:[#allocation2 + $0x18] sm:$0xff] (!%p1421_p9) }
 0x178   : > { %v528_v52 = vadd.f32 %v489_v50, %v366_v46  ;;  %v1595_v53 = vpop.f32.mrb[2].mxu1  ;;  %1623 = vmatprep.mubr.msk.f32.mxu1 (!%p1421_p9), %vm536_vm4, %v1496_v27  ;;  %1715 = vmatpush3.bf16.msra.mxu1 (!%p1421_p9), %v1712_v33  ;;  %v600_v46 = vld [vmem:[#allocation2 + $0x10] sm:$0xff] (!%p1421_p9) }
 0x179   : > { %547 = vst.msk [vmem:[#allocation2 + $0x50] sm:$0xff] %vm536_vm4, %v530_v49  ;;  %v531_v54 = vadd.f32 %v1595_v53, %v369_v48  ;;  %v492_v55 = vpop.f32.mrb[3].mxu1  ;;  %1640 = vmatprep.mubr.msk.f32.mxu0 (!%p1421_p9), %vm536_vm4, %v598_v43  ;;  %v602_v48 = vld [vmem:[#allocation2 + $0x20] sm:$0xff] (!%p1421_p9)  ;;  %v604_v50 = vld [vmem:[#allocation2 + $0x30] sm:$0xff] (!%p1421_p9) }
 0x17a   : > { %545 = vst.msk [vmem:[#allocation2 + $0x40] sm:$0xff] %vm536_vm4, %v528_v52  ;;  %v529_v56 = vadd.f32 %v492_v55, %v367_v51  ;;  %v605_v51 = vld [vmem:[#allocation2 + $0x38] sm:$0xff] (!%p1421_p9) }
 0x17b   : > { %548 = vst.msk [vmem:[#allocation2 + $0x58] sm:$0xff] %vm536_vm4, %v531_v54  ;;  %1624 = vmatmul.mubr.msk.f32.gmra.mrb[2].mxu1 (!%p1421_p9), %vm536_vm4, %v1497_v35  ;;  %1641 = vmatmul.mubr.msk.f32.vlgmr.msra.gmra.mrb[0].mxu0 (!%p1421_p9), %vm536_vm4, %v599_v45  ;;  %v603_v49 = vld [vmem:[#allocation2 + $0x28] sm:$0xff] (!%p1421_p9) }
 0x17c   : > { %546 = vst.msk [vmem:[#allocation2 + $0x48] sm:$0xff] %vm536_vm4, %v529_v56  ;;  %1626 = vmatprep.mubr.msk.f32.mxu1 (!%p1421_p9), %vm536_vm4, %v1500_v36  ;;  %1643 = vmatprep.mubr.msk.f32.mxu0 (!%p1421_p9), %vm536_vm4, %v600_v46 }
 0x17e   : > { %v1598_v59 = vpop.f32.mrb[4].mxu1  ;;  %556 = sbr.rel (%p1421_p9) target bundleno = 843 (0x34b), region = 48 }
 0x17f   : > { %v534_v61 = vadd.f32 %v1598_v59, %v372_v57  ;;  %v505_v62 = vpop.f32.mrb[5].mxu1  ;;  %1627 = vmatmul.mubr.msk.f32.gmra.mrb[4].mxu1 (!%p1421_p9), %vm536_vm4, %v1501_v40  ;;  %1644 = vmatmul.mubr.msk.f32.gmra.mrb[2].mxu0 (!%p1421_p9), %vm536_vm4, %v601_v47 }
 0x180   : > { %v532_v0 = vadd.f32 %v505_v62, %v370_v58  ;;  %v1599_v1 = vpop.f32.mrb[6].mxu1  ;;  %1629 = vmatprep.mubr.msk.f32.mxu1 (!%p1421_p9), %vm536_vm4, %v1504_v41  ;;  %1646 = vmatprep.mubr.msk.f32.mxu0 (!%p1421_p9), %vm536_vm4, %v602_v48  ;;  %v608_v54 = vld [vmem:[#allocation2 + $0x50] sm:$0xff] (!%p1421_p9) }
 0x181   : > { %551 = vst.msk [vmem:[#allocation2 + $0x70] sm:$0xff] %vm536_vm4, %v534_v61  ;;  %v535_v2 = vadd.f32 %v1599_v1, %v373_v60  ;;  %v508_v3 = vpop.f32.mrb[7].mxu1  ;;  %v606_v52 = vld [vmem:[#allocation2 + $0x40] sm:$0xff] (!%p1421_p9)  ;;  %v1054_v60 = vld [vmem:[%s2179_s4 + $0x10] sm:$0xff] (!%p1421_p9)  ;;  %v1055_v61 = vld [vmem:[%s2179_s4 + $0x18] sm:$0xff] (!%p1421_p9) }
 0x182   : > { %549 = vst.msk [vmem:[#allocation2 + $0x60] sm:$0xff] %vm536_vm4, %v532_v0  ;;  %v533_v4 = vadd.f32 %v508_v3, %v371_v63  ;;  %v609_v55 = vld [vmem:[#allocation2 + $0x58] sm:$0xff] (!%p1421_p9)  ;;  %v1716_v62 = vpack.c.bf16 (!%p1421_p9), %v1055_v61, %v1054_v60 }
 0x183   : > { %552 = vst.msk [vmem:[#allocation2 + $0x78] sm:$0xff] %vm536_vm4, %v535_v2  ;;  %1630 = vmatmul.mubr.msk.f32.gmra.mrb[6].mxu1 (!%p1421_p9), %vm536_vm4, %v1505_v44  ;;  %1647 = vmatmul.mubr.msk.f32.gmra.mrb[4].mxu0 (!%p1421_p9), %vm536_vm4, %v603_v49  ;;  %v607_v53 = vld [vmem:[#allocation2 + $0x48] sm:$0xff] (!%p1421_p9) }
 0x184   : > { %550 = vst.msk [vmem:[#allocation2 + $0x68] sm:$0xff] %vm536_vm4, %v533_v4  ;;  %1649 = vmatprep.mubr.msk.f32.mxu0 (!%p1421_p9), %vm536_vm4, %v604_v50  ;;  %1717 = vmatprep.subr.bf16.mxu1 (!%p1421_p9), %v1716_v62 }
 0x185   : > { %1719 = vmatpush3.bf16.msra.mxu1 %v1716_v62 }
 0x187   : > { %1650 = vmatmul.mubr.msk.f32.gmra.mrb[6].mxu0 %vm536_vm4, %v605_v51 }
 0x188   : > { %1652 = vmatprep.mubr.msk.f32.mxu0 %vm536_vm4, %v606_v52  ;;  %v612_v58 = vld [vmem:[#allocation2 + $0x70] sm:$0xff] }
 0x189   : > { %v610_v56 = vld [vmem:[#allocation2 + $0x60] sm:$0xff] }
 0x18a   : > { %v613_v59 = vld [vmem:[#allocation2 + $0x78] sm:$0xff] }
 0x18b   : > { %1653 = vmatmul.mubr.msk.f32.gmra.mrb[8].mxu0 %vm536_vm4, %v607_v53  ;;  %v611_v57 = vld [vmem:[#allocation2 + $0x68] sm:$0xff] }
 0x18c   : > { %1655 = vmatprep.mubr.msk.f32.mxu0 %vm536_vm4, %v608_v54 }
 0x18f   : > { %1656 = vmatmul.mubr.msk.f32.gmra.mrb[10].mxu0 %vm536_vm4, %v609_v55 }
 0x190   : > { %1658 = vmatprep.mubr.msk.f32.mxu0 %vm536_vm4, %v610_v56 }
 0x193   : > { %1659 = vmatmul.mubr.msk.f32.gmra.mrb[12].mxu0 %vm536_vm4, %v611_v57 }
 0x194   : > { %1661 = vmatprep.mubr.msk.f32.mxu0 %vm536_vm4, %v612_v58 }
 0x197   : > { %1662 = vmatmul.mubr.msk.f32.gmra.mrb[14].mxu0 %vm536_vm4, %v613_v59 }
 0x24a   : > { %v1622_v63 = vpop.f32.mrb[0].mxu1 }
 0x24b   : > { %v768_v0 = vpop.f32.mrb[1].mxu1 }
 0x24e   : > { %v1625_v1 = vpop.f32.mrb[2].mxu1  ;;  %v1642_v8 = vpop.f32.mrb[0].mxu0 }
 0x24f   : > { %v778_v2 = vpop.f32.mrb[3].mxu1  ;;  %v1005_v9 = vadd.f32 %v1642_v8, %v2051_v5  ;;  %v921_v10 = vpop.f32.mrb[1].mxu0 }
 0x250   : > { %v1004_v11 = vadd.f32 %v2051_v5, %v921_v10 }
 0x251   : > { %v1021_v12 = vmax.f32 %v1005_v9, 0.0 }
 0x252   : > { %v2044_v3 = vpop.f32.mrb[4].mxu1  ;;  %v1020_v13 = vmax.f32 %v1004_v11, 0.0  ;;  %v1645_v14 = vpop.f32.mrb[2].mxu0 }
 0x253   : > { %v2046_v4 = vpop.f32.mrb[5].mxu1  ;;  %1037 = vst.msk [vmem:[%s1910_s16 + $0x8] sm:$0xff] %vm536_vm4, %v1021_v12  ;;  %v1007_v15 = vadd.f32 %v1645_v14, %v2051_v5  ;;  %v931_v16 = vpop.f32.mrb[3].mxu0 }
 0x254   : > { %1036 = vst.msk [vmem:[%s1910_s16] sm:$0xff] %vm536_vm4, %v1020_v13  ;;  %v1006_v17 = vadd.f32 %v2051_v5, %v931_v16  ;;  %1672 = vmatprep.mubr.msk.f32.mxu1 %vm536_vm4, %v1020_v13 }
 0x255   : > { %v1023_v18 = vmax.f32 %v1007_v15, 0.0  ;;  %1673 = vmatmul.mubr.msk.f32.vlgmr.msra.gmra.mrb[8].mxu1 %vm536_vm4, %v1021_v12 }
 0x256   : > { %v2053_v6 = vpop.f32.mrb[6].mxu1  ;;  %v1022_v19 = vmax.f32 %v1006_v17, 0.0  ;;  %v1648_v20 = vpop.f32.mrb[4].mxu0 }
 0x257   : > { %v2055_v7 = vpop.f32.mrb[7].mxu1  ;;  %1039 = vst.msk [vmem:[%s1910_s16 + $0x18] sm:$0xff] %vm536_vm4, %v1023_v18  ;;  %v1009_v21 = vadd.f32 %v1648_v20, %v2051_v5  ;;  %v941_v22 = vpop.f32.mrb[5].mxu0 }
 0x258   : > { %1038 = vst.msk [vmem:[%s1910_s16 + $0x10] sm:$0xff] %vm536_vm4, %v1022_v19  ;;  %v1008_v23 = vadd.f32 %v2051_v5, %v941_v22  ;;  %1675 = vmatprep.mubr.msk.f32.mxu1 %vm536_vm4, %v1022_v19 }
 0x259   : > { %v1025_v24 = vmax.f32 %v1009_v21, 0.0  ;;  %1676 = vmatmul.mubr.msk.f32.gmra.mrb[10].mxu1 %vm536_vm4, %v1023_v18 }
 0x25a   : > { %v1024_v25 = vmax.f32 %v1008_v23, 0.0  ;;  %v1651_v26 = vpop.f32.mrb[6].mxu0 }
 0x25b   : > { %1041 = vst.msk [vmem:[%s1910_s16 + $0x28] sm:$0xff] %vm536_vm4, %v1025_v24  ;;  %v1011_v27 = vadd.f32 %v1651_v26, %v2051_v5  ;;  %v951_v28 = vpop.f32.mrb[7].mxu0 }
 0x25c   : > { %1040 = vst.msk [vmem:[%s1910_s16 + $0x20] sm:$0xff] %vm536_vm4, %v1024_v25  ;;  %v1010_v29 = vadd.f32 %v2051_v5, %v951_v28  ;;  %1678 = vmatprep.mubr.msk.f32.mxu1 %vm536_vm4, %v1024_v25 }
 0x25d   : > { %v1027_v30 = vmax.f32 %v1011_v27, 0.0  ;;  %1679 = vmatmul.mubr.msk.f32.gmra.mrb[12].mxu1 %vm536_vm4, %v1025_v24 }
 0x25e   : > { %v1026_v31 = vmax.f32 %v1010_v29, 0.0  ;;  %v1654_v32 = vpop.f32.mrb[8].mxu0 }
 0x25f   : > { %1043 = vst.msk [vmem:[%s1910_s16 + $0x38] sm:$0xff] %vm536_vm4, %v1027_v30  ;;  %v967_v33 = vadd.f32 %v1654_v32, %v1622_v63  ;;  %v961_v34 = vpop.f32.mrb[9].mxu0 }
 0x260   : > { %1042 = vst.msk [vmem:[%s1910_s16 + $0x30] sm:$0xff] %vm536_vm4, %v1026_v31  ;;  %v962_v35 = vadd.f32 %v961_v34, %v768_v0  ;;  %1681 = vmatprep.mubr.msk.f32.mxu1 %vm536_vm4, %v1026_v31  ;;  %v1455_v0 = vld [vmem:[%s2179_s4 + $0x20] ss:$0 sm:$0xff] }
 0x261   : > { %v1013_v36 = vadd.f32 %v2051_v5, %v967_v33  ;;  %1682 = vmatmul.mubr.msk.f32.gmra.mrb[14].mxu1 %vm536_vm4, %v1027_v30 }
 0x262   : > { %v1012_v37 = vadd.f32 %v2051_v5, %v962_v35  ;;  %v1657_v38 = vpop.f32.mrb[10].mxu0 }
 0x263   : > { %v1029_v39 = vmax.f32 %v1013_v36, 0.0  ;;  %v977_v40 = vadd.f32 %v1657_v38, %v1625_v1  ;;  %v971_v41 = vpop.f32.mrb[11].mxu0 }
 0x264   : > { %v1028_v42 = vmax.f32 %v1012_v37, 0.0  ;;  %v972_v43 = vadd.f32 %v971_v41, %v778_v2 }
 0x265   : > { %1045 = vst.msk [vmem:[%s1910_s16 + $0x48] sm:$0xff] %vm536_vm4, %v1029_v39  ;;  %v1015_v44 = vadd.f32 %v2051_v5, %v977_v40 }
 0x266   : > { %1044 = vst.msk [vmem:[%s1910_s16 + $0x40] sm:$0xff] %vm536_vm4, %v1028_v42  ;;  %v1014_v45 = vadd.f32 %v2051_v5, %v972_v43  ;;  %v1660_v46 = vpop.f32.mrb[12].mxu0  ;;  %1684 = vmatprep.mubr.msk.f32.mxu1 %vm536_vm4, %v1028_v42 }
 0x267   : > { %v1031_v47 = vmax.f32 %v1015_v44, 0.0  ;;  %v987_v48 = vadd.f32 %v1660_v46, %v2044_v3  ;;  %v981_v49 = vpop.f32.mrb[13].mxu0  ;;  %1685 = vmatmul.mubr.msk.f32.gmra.mrb[16].mxu1 %vm536_vm4, %v1029_v39 }
 0x268   : > { %v1030_v50 = vmax.f32 %v1014_v45, 0.0  ;;  %v982_v51 = vadd.f32 %v981_v49, %v2046_v4 }
 0x269   : > { %1047 = vst.msk [vmem:[%s1910_s16 + $0x58] sm:$0xff] %vm536_vm4, %v1031_v47  ;;  %v1017_v52 = vadd.f32 %v2051_v5, %v987_v48 }
 0x26a   : > { %1046 = vst.msk [vmem:[%s1910_s16 + $0x50] sm:$0xff] %vm536_vm4, %v1030_v50  ;;  %v1016_v53 = vadd.f32 %v2051_v5, %v982_v51  ;;  %v1663_v54 = vpop.f32.mrb[14].mxu0  ;;  %1687 = vmatprep.mubr.msk.f32.mxu1 %vm536_vm4, %v1030_v50 }
 0x26b   : > { %v1033_v55 = vmax.f32 %v1017_v52, 0.0  ;;  %v997_v56 = vadd.f32 %v1663_v54, %v2053_v6  ;;  %v991_v57 = vpop.f32.mrb[15].mxu0  ;;  %1688 = vmatmul.mubr.msk.f32.gmra.mrb[18].mxu1 %vm536_vm4, %v1031_v47 }
 0x26c   : > { %v1032_v58 = vmax.f32 %v1016_v53, 0.0  ;;  %v992_v59 = vadd.f32 %v991_v57, %v2055_v7 }
 0x26d   : > { %1049 = vst.msk [vmem:[%s1910_s16 + $0x68] sm:$0xff] %vm536_vm4, %v1033_v55  ;;  %v1019_v60 = vadd.f32 %v2051_v5, %v997_v56 }
 0x26e   : > { %1048 = vst.msk [vmem:[%s1910_s16 + $0x60] sm:$0xff] %vm536_vm4, %v1032_v58  ;;  %v1018_v61 = vadd.f32 %v2051_v5, %v992_v59  ;;  %1690 = vmatprep.mubr.msk.f32.mxu1 %vm536_vm4, %v1032_v58 }
 0x26f   : > { %v1035_v62 = vmax.f32 %v1019_v60, 0.0  ;;  %1691 = vmatmul.mubr.msk.f32.gmra.mrb[20].mxu1 %vm536_vm4, %v1033_v55 }
 0x270   : > { %v1034_v63 = vmax.f32 %v1018_v61, 0.0 }
 0x271   : > { %1051 = vst.msk [vmem:[%s1910_s16 + $0x78] sm:$0xff] %vm536_vm4, %v1035_v62 }
 0x272   : > { %1050 = vst.msk [vmem:[%s1910_s16 + $0x70] sm:$0xff] %vm536_vm4, %v1034_v63  ;;  %1693 = vmatprep.mubr.msk.f32.mxu1 %vm536_vm4, %v1034_v63 }
 0x273   : > { %1694 = vmatmul.mubr.msk.f32.gmra.mrb[22].mxu1 %vm536_vm4, %v1035_v62 }
 0x328   : > { %v1674_v1 = vpop.f32.mrb[8].mxu1 }
 0x329   : > { %v1181_v2 = vadd.f32 %v1674_v1, %v1455_v0  ;;  %v1175_v3 = vpop.f32.mrb[9].mxu1 }
 0x32a   : > { %v1176_v4 = vadd.f32 %v1455_v0, %v1175_v3 }
 0x32b   : > { %1256 = vst.msk [vmem:[%s1915_s19 + $0x8] sm:$0xff] %vm1254_vm5, %v1181_v2 }
 0x32c   : > { %1255 = vst.msk [vmem:[%s1915_s19] sm:$0xff] %vm1254_vm5, %v1176_v4  ;;  %v1677_v5 = vpop.f32.mrb[10].mxu1 }
 0x32d   : > { %v1191_v6 = vadd.f32 %v1677_v5, %v1455_v0  ;;  %v1185_v7 = vpop.f32.mrb[11].mxu1 }
 0x32e   : > { %v1186_v8 = vadd.f32 %v1455_v0, %v1185_v7 }
 0x32f   : > { %1258 = vst.msk [vmem:[%s1915_s19 + $0x18] sm:$0xff] %vm1254_vm5, %v1191_v6 }
 0x330   : > { %1257 = vst.msk [vmem:[%s1915_s19 + $0x10] sm:$0xff] %vm1254_vm5, %v1186_v8  ;;  %v1680_v9 = vpop.f32.mrb[12].mxu1 }
 0x331   : > { %v1201_v10 = vadd.f32 %v1680_v9, %v1455_v0  ;;  %v1195_v11 = vpop.f32.mrb[13].mxu1 }
 0x332   : > { %v1196_v12 = vadd.f32 %v1455_v0, %v1195_v11 }
 0x333   : > { %1260 = vst.msk [vmem:[%s1915_s19 + $0x28] sm:$0xff] %vm1254_vm5, %v1201_v10 }
 0x334   : > { %1259 = vst.msk [vmem:[%s1915_s19 + $0x20] sm:$0xff] %vm1254_vm5, %v1196_v12  ;;  %v1683_v13 = vpop.f32.mrb[14].mxu1 }
 0x335   : > { %v1211_v14 = vadd.f32 %v1683_v13, %v1455_v0  ;;  %v1205_v15 = vpop.f32.mrb[15].mxu1 }
 0x336   : > { %v1206_v16 = vadd.f32 %v1455_v0, %v1205_v15 }
 0x337   : > { %1262 = vst.msk [vmem:[%s1915_s19 + $0x38] sm:$0xff] %vm1254_vm5, %v1211_v14 }
 0x338   : > { %1261 = vst.msk [vmem:[%s1915_s19 + $0x30] sm:$0xff] %vm1254_vm5, %v1206_v16 }
 0x33a   : > { %v1686_v17 = vpop.f32.mrb[16].mxu1 }
 0x33b   : > { %v1221_v18 = vadd.f32 %v1686_v17, %v1455_v0  ;;  %v1215_v19 = vpop.f32.mrb[17].mxu1 }
 0x33c   : > { %v1216_v20 = vadd.f32 %v1455_v0, %v1215_v19 }
 0x33d   : > { %1264 = vst.msk [vmem:[%s1915_s19 + $0x48] sm:$0xff] %vm1254_vm5, %v1221_v18 }
 0x33e   : > { %1263 = vst.msk [vmem:[%s1915_s19 + $0x40] sm:$0xff] %vm1254_vm5, %v1216_v20  ;;  %v1689_v21 = vpop.f32.mrb[18].mxu1 }
 0x33f   : > { %v1231_v22 = vadd.f32 %v1689_v21, %v1455_v0  ;;  %v1225_v23 = vpop.f32.mrb[19].mxu1 }
 0x340   : > { %v1226_v24 = vadd.f32 %v1455_v0, %v1225_v23 }
 0x341   : > { %1266 = vst.msk [vmem:[%s1915_s19 + $0x58] sm:$0xff] %vm1254_vm5, %v1231_v22 }
 0x342   : > { %1265 = vst.msk [vmem:[%s1915_s19 + $0x50] sm:$0xff] %vm1254_vm5, %v1226_v24  ;;  %v1692_v25 = vpop.f32.mrb[20].mxu1 }
 0x343   : > { %v1241_v26 = vadd.f32 %v1692_v25, %v1455_v0  ;;  %v1235_v27 = vpop.f32.mrb[21].mxu1 }
 0x344   : > { %v1236_v28 = vadd.f32 %v1455_v0, %v1235_v27 }
 0x345   : > { %1268 = vst.msk [vmem:[%s1915_s19 + $0x68] sm:$0xff] %vm1254_vm5, %v1241_v26 }
 0x346   : > { %1267 = vst.msk [vmem:[%s1915_s19 + $0x60] sm:$0xff] %vm1254_vm5, %v1236_v28  ;;  %v1695_v29 = vpop.f32.mrb[22].mxu1 }
 0x347   : > { %v1251_v30 = vadd.f32 %v1695_v29, %v1455_v0  ;;  %v1245_v31 = vpop.f32.mrb[23].mxu1 }
 0x348   : > { %v1246_v32 = vadd.f32 %v1455_v0, %v1245_v31 }
 0x349   : > { %1270 = vst.msk [vmem:[%s1915_s19 + $0x78] sm:$0xff] %vm1254_vm5, %v1251_v30 }
 0x34a   : > { %1269 = vst.msk [vmem:[%s1915_s19 + $0x70] sm:$0xff] %vm1254_vm5, %v1246_v32 }
 0x34b PF: > { %s17_s25 = sadd.s32 1, %s1824_s25   ;;  %s2182_s21 = smov %s1816_s23 }
 0x34c   : > { %p14_p10 = scmp.ge.s32.totalorder %s17_s25, 14   ;;  %s2183_s22 = smov %s1820_s24 }
 0x34d   : > { %s2184_s23 = smov %s2187_s26  ;;  %s2185_s24 = smov %s2191_s27 }
 0x34e   :  { %16 = sbr.rel (!%p14_p10) target bundleno = 3 (0x3), region = 96 }

</bundles_post_ra>
